<compile_context>
chip_gen: v7x
topology: tpu7x:2x2x1
jax: 0.10.0
libtpu: 0.0.40
codegen_flags: <defaults>
</compile_context>

<pallas_src>
import functools

import jax
import jax.numpy as jnp
import numpy as np
from jax import lax
from jax.experimental import pallas as pl
from jax.experimental.pallas import tpu as pltpu


def _candidate_kernel(q_ref, k_ref, w_ref, b_ref, out_ref, khash_ref, *, chunk):
    # Per grid step (one batch element x one query tile):
    #   q_ref     : (1, TQ, D) f32   query tile
    #   k_ref     : (1, L, D)  f32   full key sequence of this batch element
    #   w_ref     : (D, H)     f32   LSH linear weight (transposed vs nn.Linear)
    #   b_ref     : (1, H)     f32   LSH linear bias
    #   out_ref   : (1, K, TQ) i32   candidates, slot-major (transposed)
    #   khash_ref : (L, H)     f32   VMEM scratch: cached key hashes (per batch)
    w = w_ref[...]
    bias = b_ref[...]

    tq = q_ref.shape[1]
    L = k_ref.shape[1]
    H = w.shape[1]
    K = out_ref.shape[1]
    C = chunk
    n_chunks = L // C

    # --- per-batch key hashing, cached across query tiles -------------------
    # The query-tile axis is innermost and sequential ("arbitrary"), so the
    # scratch written at t == 0 persists for all tiles of this batch element.
    @pl.when(pl.program_id(1) == 0)
    def _():
        k_bin = (k_ref[0] > 0).astype(jnp.float32)
        khash_ref[...] = (
            jnp.dot(k_bin, w, preferred_element_type=jnp.float32) + bias)

    # Query hash for this tile: identical dot / dtype / contraction order as
    # the key path so identical binary rows give bit-identical hashes.
    q_bin = (q_ref[0] > 0).astype(jnp.float32)
    q_hash = jnp.dot(q_bin, w, preferred_element_type=jnp.float32) + bias  # (TQ, H)

    # (C, C) inclusive lower-triangular ones, built in-kernel (VPU iota; the
    # MXU is the binding unit here so this is free filler).
    tri = (lax.broadcasted_iota(jnp.int32, (C, C), 0)
           >= lax.broadcasted_iota(jnp.int32, (C, C), 1)).astype(jnp.bfloat16)

    carry = jnp.zeros((1, tq), jnp.float32)       # matches in chunks < c
    slot_acc = [jnp.zeros((1, tq), jnp.float32) for _ in range(K)]

    for c in range(n_chunks):
        k_hash_c = khash_ref[pl.ds(c * C, C), :]                  # (C, H)

        # matches[j, i] = all_h (k_hash[c*C+j, h] == q_hash[i, h]); unrolled
        # over the small static H, only (C, TQ) 2-D masks are materialized,
        # query index on the lane (minor) axis.
        matches = None
        for h in range(H):
            eq_h = k_hash_c[:, h:h + 1] == q_hash[None, :, h]      # (C, TQ)
            matches = eq_h if matches is None else (matches & eq_h)

        # Local inclusive prefix count along the key axis via a small bf16
        # MXU matmul (exact 0/1 operands, f32 accumulation -> exact counts).
        rank_local = jnp.dot(tri, matches.astype(jnp.bfloat16),
                             preferred_element_type=jnp.float32)   # (C, TQ)
        rank = rank_local + carry                                  # global rank
        carry = rank[C - 1:C, :]                                   # running total

        # Candidate values (global key index + 1) only at match rows.  jidx is
        # (C, 1) and broadcast by jnp.where -- no (L, TQ) index plane.
        jidx = (lax.broadcasted_iota(jnp.int32, (C, 1), 0)
                + (c * C + 1)).astype(jnp.float32)
        val = jnp.where(matches, jidx, 0.0)                        # (C, TQ)

        # Slot s holds the unique key with (match & rank == s+1); since rank
        # increments exactly at match rows, val is nonzero at exactly one row
        # per (slot, query) globally, so the masked sums pick it out exactly.
        for s in range(K):
            sel = rank == float(s + 1)
            slot_acc[s] = slot_acc[s] + jnp.sum(
                jnp.where(sel, val, 0.0), axis=0, keepdims=True)

    cand = jnp.concatenate(slot_acc, axis=0).astype(jnp.int32) - 1  # (K, TQ)
    out_ref[0] = cand


def _build_candidate_call(B, L, D, H, k_max, tq, chunk, single_buffer):
    kernel = functools.partial(_candidate_kernel, chunk=chunk)

    def rare_spec(shape, imap):
        # Blocks whose index never (or only per batch) changes don't need
        # double buffering; a single VMEM copy saves space (perf review).
        if single_buffer:
            return pl.BlockSpec(shape, imap, pipeline_mode=pl.Buffered(1))
        return pl.BlockSpec(shape, imap)

    return pl.pallas_call(
        kernel,
        out_shape=jax.ShapeDtypeStruct((B, k_max, L), jnp.int32),
        grid_spec=pltpu.PrefetchScalarGridSpec(
            num_scalar_prefetch=0,
            grid=(B, L // tq),
            in_specs=[
                pl.BlockSpec((1, tq, D), lambda b, t: (b, t, 0)),   # query tile
                rare_spec((1, L, D), lambda b, t: (b, 0, 0)),       # key (per batch)
                rare_spec((D, H), lambda b, t: (0, 0)),             # lsh weight
                rare_spec((1, H), lambda b, t: (0, 0)),             # lsh bias
            ],
            out_specs=pl.BlockSpec((1, k_max, tq), lambda b, t: (b, 0, t)),
            scratch_shapes=[pltpu.VMEM((L, H), jnp.float32)],       # key hashes
        ),
        compiler_params=pltpu.CompilerParams(
            # Batch axis shards across TensorCores; the query-tile axis carries
            # the cached key-hash scratch, so it must be sequential.
            dimension_semantics=("parallel", "arbitrary"),
            # Safe on all generations (<= v7x's 64 MiB physical VMEM); actual
            # footprint after chunking is only a few MiB.
            vmem_limit_bytes=48 * 1024 * 1024,
        ),
    )


def candidate_finder(query, key, weight, bias, k_max, *, tq=None, chunk=None):
    """Pallas implementation of CandidateFinder.forward for one head.

    query, key: (B, L, D) f32; weight: (D, H) f32 (nn.Linear weight
    transposed); bias: (1, H) f32.  Returns (B, L, k_max) int32, -1 padded.
    """
    B, L, D = query.shape
    H = weight.shape[1]
    # Candidate indices are encoded as f32 (j + 1) before the masked sum;
    # exact only for L < 2**24.
    assert L < (1 << 24)

    if tq is None:
        # Query-axis tile: bounds (C, TQ) intermediates; 256 fits every
        # generation's VMEM budget (raise to 512 on v6e if desired).
        tq = next((t for t in (256, 128) if L % t == 0), L)
    assert L % tq == 0
    if chunk is None:
        # Key chunk for the prefix-count matmul; 128-aligned for the MXU.
        # TODO(synk): for large L not divisible by 128, pad L instead of
        # falling back to a single (L, L) chunk.
        chunk = next((c for c in (512, 256, 128) if L % c == 0), L)
    assert L % chunk == 0

    args = (query, key, weight, bias)
    try:
        out_t = _build_candidate_call(B, L, D, H, k_max, tq, chunk,
                                      single_buffer=True)(*args)
    except Exception:
        # pipeline_mode / Buffered(1) not supported in this JAX build: fall
        # back to default double-buffering (identical results).
        out_t = _build_candidate_call(B, L, D, H, k_max, tq, chunk,
                                      single_buffer=False)(*args)

    # Kernel emits (B, K, L) so stores are lane-dense; restore (B, L, K).
    return jnp.transpose(out_t, (0, 2, 1))


def _reference(query, key, weight, bias, k_max):
    """Pure numpy re-implementation of the PyTorch forward pass."""
    qb = (np.asarray(query) > 0).astype(np.float32)
    kb = (np.asarray(key) > 0).astype(np.float32)
    qh = qb @ np.asarray(weight) + np.asarray(bias)
    kh = kb @ np.asarray(weight) + np.asarray(bias)
    B, L, _ = qh.shape
    out = np.full((B, L, k_max), -1, dtype=np.int32)
    for b in range(B):
        for i in range(L):
            js = [j for j in range(L) if np.array_equal(qh[b, i], kh[b, j])]
            for s, j in enumerate(js[:k_max]):
                out[b, i, s] = j
    return out


if __name__ == "__main__":
    # Small config consistent with the module: d_key=8, n_hash_bits=4, k_max=4.
    B, L, D, H, K_MAX = 2, 8, 8, 4, 4

    root = jax.random.PRNGKey(0)
    kq, kk, kw, kb = jax.random.split(root, 4)
    query = jax.random.normal(kq, (B, L, D), dtype=jnp.float32)
    key_t = jax.random.normal(kk, (B, L, D), dtype=jnp.float32)
    # Plant a few identical rows so some LSH buckets actually collide
    # (random binary patterns of width 8 rarely match otherwise).
    key_t = key_t.at[:, 0, :].set(query[:, 2, :])
    key_t = key_t.at[:, 5, :].set(query[:, 2, :])
    key_t = key_t.at[:, 3, :].set(query[:, 6, :])

    # Deterministic "lsh_tables[head_idx][0]" = Linear(D, H) parameters.
    weight = jax.random.normal(kw, (D, H), dtype=jnp.float32) * 0.1
    bias = jax.random.normal(kb, (1, H), dtype=jnp.float32) * 0.1

    out = candidate_finder(query, key_t, weight, bias, K_MAX)
    out = jax.block_until_ready(out)

    ref = _reference(query, key_t, weight, bias, K_MAX)
    assert np.array_equal(np.asarray(out), ref), (np.asarray(out), ref)

    print("KERNEL_OK")
</pallas_src>

<mosaic_0001>
module attributes {stable_mosaic.version = 11 : i64} {
  func.func @_candidate_kernel(%arg0: i32, %arg1: i32, %arg2: memref<1x8x8xf32, #tpu.memory_space<vmem>>, %arg3: memref<1x8x8xf32, #tpu.memory_space<vmem>>, %arg4: memref<8x4xf32, #tpu.memory_space<vmem>>, %arg5: memref<1x4xf32, #tpu.memory_space<vmem>>, %arg6: memref<1x4x8xi32, #tpu.memory_space<vmem>>, %arg7: memref<8x4xf32, #tpu.memory_space<vmem>>) attributes {dimension_semantics = [#tpu.dimension_semantics<parallel>, #tpu.dimension_semantics<arbitrary>], iteration_bounds = array<i64: 2, 1>, scalar_prefetch = 0 : i64, scratch_operands = 1 : i64, tpu.core_type = #tpu.core_type<tc>, window_params = [{transform_indices = @transform_0, window_bounds = array<i64: 1, 8, 8>}, {pipeline_mode = #tpu.pipeline_mode<synchronous>, transform_indices = @transform_1, window_bounds = array<i64: 1, 8, 8>}, {pipeline_mode = #tpu.pipeline_mode<synchronous>, transform_indices = @transform_2, window_bounds = array<i64: 8, 4>}, {pipeline_mode = #tpu.pipeline_mode<synchronous>, transform_indices = @transform_3, window_bounds = array<i64: 1, 4>}, {transform_indices = @transform_4, window_bounds = array<i64: 1, 4, 8>}]} {
    %c0 = arith.constant 0 : index
    %c0_0 = arith.constant 0 : index
    %0 = vector.load %arg4[%c0, %c0_0] : memref<8x4xf32, #tpu.memory_space<vmem>>, vector<8x4xf32>
    %c0_1 = arith.constant 0 : index
    %c0_2 = arith.constant 0 : index
    %1 = vector.load %arg5[%c0_1, %c0_2] : memref<1x4xf32, #tpu.memory_space<vmem>>, vector<1x4xf32>
    %c0_i32 = arith.constant 0 : i32
    %2 = arith.cmpi eq, %arg1, %c0_i32 : i32
    %3 = arith.extui %2 : i1 to i32
    %c0_i32_3 = arith.constant 0 : i32
    %4 = arith.cmpi ne, %3, %c0_i32_3 : i32
    scf.if %4 {
      %c0_33 = arith.constant 0 : index
      %c0_34 = arith.constant 0 : index
      %c0_35 = arith.constant 0 : index
      %106 = vector.load %arg3[%c0_33, %c0_34, %c0_35] : memref<1x8x8xf32, #tpu.memory_space<vmem>>, vector<1x8x8xf32>
      %107 = vector.shape_cast %106 : vector<1x8x8xf32> to vector<8x8xf32>
      %cst_36 = arith.constant 0.000000e+00 : f32
      %108 = vector.broadcast %cst_36 : f32 to vector<8x8xf32>
      %109 = arith.cmpf ogt, %107, %108 : vector<8x8xf32>
      %110 = arith.extui %109 : vector<8x8xi1> to vector<8x8xi32>
      %111 = arith.sitofp %110 : vector<8x8xi32> to vector<8x8xf32>
      %cst_37 = arith.constant dense<0.000000e+00> : vector<8x4xf32>
      %112 = tpu.matmul %111, %0, %cst_37 {dimension_numbers = #tpu.dot_dimension_numbers<[1], [0], [0], [1], [0, 0, 1, 1], [], []>} : vector<8x8xf32>, vector<8x4xf32>, vector<8x4xf32> -> vector<8x4xf32>
      %113 = vector.broadcast %1 : vector<1x4xf32> to vector<8x4xf32>
      %114 = arith.addf %112, %113 : vector<8x4xf32>
      %c0_38 = arith.constant 0 : index
      %c0_39 = arith.constant 0 : index
      %115 = vector.load %arg7[%c0_38, %c0_39] : memref<8x4xf32, #tpu.memory_space<vmem>>, vector<8x4xf32>
      tpu.vector_store %arg7[%c0_38, %c0_39], %114 {strides = array<i32>} : memref<8x4xf32, #tpu.memory_space<vmem>>, vector<8x4xf32>,
    } else {
    }
    %c0_4 = arith.constant 0 : index
    %c0_5 = arith.constant 0 : index
    %c0_6 = arith.constant 0 : index
    %5 = vector.load %arg2[%c0_4, %c0_5, %c0_6] : memref<1x8x8xf32, #tpu.memory_space<vmem>>, vector<1x8x8xf32>
    %6 = vector.shape_cast %5 : vector<1x8x8xf32> to vector<8x8xf32>
    %cst = arith.constant 0.000000e+00 : f32
    %7 = vector.broadcast %cst : f32 to vector<8x8xf32>
    %8 = arith.cmpf ogt, %6, %7 : vector<8x8xf32>
    %9 = arith.extui %8 : vector<8x8xi1> to vector<8x8xi32>
    %10 = arith.sitofp %9 : vector<8x8xi32> to vector<8x8xf32>
    %cst_7 = arith.constant dense<0.000000e+00> : vector<8x4xf32>
    %11 = tpu.matmul %10, %0, %cst_7 {dimension_numbers = #tpu.dot_dimension_numbers<[1], [0], [0], [1], [0, 0, 1, 1], [], []>} : vector<8x8xf32>, vector<8x4xf32>, vector<8x4xf32> -> vector<8x4xf32>
    %12 = vector.broadcast %1 : vector<1x4xf32> to vector<8x4xf32>
    %13 = arith.addf %11, %12 : vector<8x4xf32>
    %14 = tpu.iota {dimensions = array<i32: 0>} : vector<8x8xi32>
    %15 = tpu.iota {dimensions = array<i32: 1>} : vector<8x8xi32>
    %16 = arith.cmpi sge, %14, %15 : vector<8x8xi32>
    %17 = arith.extui %16 : vector<8x8xi1> to vector<8x8xi32>
    %18 = arith.sitofp %17 : vector<8x8xi32> to vector<8x8xf32>
    %19 = arith.truncf %18 : vector<8x8xf32> to vector<8x8xbf16>
    %cst_8 = arith.constant 0.000000e+00 : f32
    %20 = vector.broadcast %cst_8 : f32 to vector<1x8xf32>
    %cst_9 = arith.constant 0.000000e+00 : f32
    %21 = vector.broadcast %cst_9 : f32 to vector<1x8xf32>
    %cst_10 = arith.constant 0.000000e+00 : f32
    %22 = vector.broadcast %cst_10 : f32 to vector<1x8xf32>
    %cst_11 = arith.constant 0.000000e+00 : f32
    %23 = vector.broadcast %cst_11 : f32 to vector<1x8xf32>
    %cst_12 = arith.constant 0.000000e+00 : f32
    %24 = vector.broadcast %cst_12 : f32 to vector<1x8xf32>
    %c0_13 = arith.constant 0 : index
    %c0_14 = arith.constant 0 : index
    %25 = vector.load %arg7[%c0_13, %c0_14] : memref<8x4xf32, #tpu.memory_space<vmem>>, vector<8x4xf32>
    %26 = vector.extract_strided_slice %25 {offsets = [0, 0], sizes = [8, 1], strides = [1, 1]} : vector<8x4xf32> to vector<8x1xf32>
    %27 = vector.extract_strided_slice %13 {offsets = [0, 0], sizes = [8, 1], strides = [1, 1]} : vector<8x4xf32> to vector<8x1xf32>
    %28 = vector.shape_cast %27 : vector<8x1xf32> to vector<8xf32>
    %29 = vector.shape_cast %28 : vector<8xf32> to vector<1x8xf32>
    %30 = vector.broadcast %26 : vector<8x1xf32> to vector<8x8xf32>
    %31 = vector.broadcast %29 : vector<1x8xf32> to vector<8x8xf32>
    %32 = arith.cmpf oeq, %30, %31 : vector<8x8xf32>
    %33 = vector.extract_strided_slice %25 {offsets = [0, 1], sizes = [8, 1], strides = [1, 1]} : vector<8x4xf32> to vector<8x1xf32>
    %34 = vector.extract_strided_slice %13 {offsets = [0, 1], sizes = [8, 1], strides = [1, 1]} : vector<8x4xf32> to vector<8x1xf32>
    %35 = vector.shape_cast %34 : vector<8x1xf32> to vector<8xf32>
    %36 = vector.shape_cast %35 : vector<8xf32> to vector<1x8xf32>
    %37 = vector.broadcast %33 : vector<8x1xf32> to vector<8x8xf32>
    %38 = vector.broadcast %36 : vector<1x8xf32> to vector<8x8xf32>
    %39 = arith.cmpf oeq, %37, %38 : vector<8x8xf32>
    %40 = arith.andi %32, %39 : vector<8x8xi1>
    %41 = vector.extract_strided_slice %25 {offsets = [0, 2], sizes = [8, 1], strides = [1, 1]} : vector<8x4xf32> to vector<8x1xf32>
    %42 = vector.extract_strided_slice %13 {offsets = [0, 2], sizes = [8, 1], strides = [1, 1]} : vector<8x4xf32> to vector<8x1xf32>
    %43 = vector.shape_cast %42 : vector<8x1xf32> to vector<8xf32>
    %44 = vector.shape_cast %43 : vector<8xf32> to vector<1x8xf32>
    %45 = vector.broadcast %41 : vector<8x1xf32> to vector<8x8xf32>
    %46 = vector.broadcast %44 : vector<1x8xf32> to vector<8x8xf32>
    %47 = arith.cmpf oeq, %45, %46 : vector<8x8xf32>
    %48 = arith.andi %40, %47 : vector<8x8xi1>
    %49 = vector.extract_strided_slice %25 {offsets = [0, 3], sizes = [8, 1], strides = [1, 1]} : vector<8x4xf32> to vector<8x1xf32>
    %50 = vector.extract_strided_slice %13 {offsets = [0, 3], sizes = [8, 1], strides = [1, 1]} : vector<8x4xf32> to vector<8x1xf32>
    %51 = vector.shape_cast %50 : vector<8x1xf32> to vector<8xf32>
    %52 = vector.shape_cast %51 : vector<8xf32> to vector<1x8xf32>
    %53 = vector.broadcast %49 : vector<8x1xf32> to vector<8x8xf32>
    %54 = vector.broadcast %52 : vector<1x8xf32> to vector<8x8xf32>
    %55 = arith.cmpf oeq, %53, %54 : vector<8x8xf32>
    %56 = arith.andi %48, %55 : vector<8x8xi1>
    %57 = arith.extui %56 : vector<8x8xi1> to vector<8x8xi32>
    %58 = arith.sitofp %57 : vector<8x8xi32> to vector<8x8xf32>
    %59 = arith.truncf %58 : vector<8x8xf32> to vector<8x8xbf16>
    %cst_15 = arith.constant dense<0.000000e+00> : vector<8x8xf32>
    %60 = tpu.matmul %19, %59, %cst_15 {dimension_numbers = #tpu.dot_dimension_numbers<[1], [0], [0], [1], [0, 0, 1, 1], [], []>} : vector<8x8xbf16>, vector<8x8xbf16>, vector<8x8xf32> -> vector<8x8xf32>
    %61 = vector.broadcast %20 : vector<1x8xf32> to vector<8x8xf32>
    %62 = arith.addf %60, %61 : vector<8x8xf32>
    %63 = tpu.iota {dimensions = array<i32: 0>} : vector<8x1xi32>
    %c1_i32 = arith.constant 1 : i32
    %64 = vector.broadcast %c1_i32 : i32 to vector<8x1xi32>
    %65 = arith.addi %63, %64 : vector<8x1xi32>
    %66 = arith.sitofp %65 : vector<8x1xi32> to vector<8x1xf32>
    %cst_16 = arith.constant 0.000000e+00 : f32
    %67 = vector.shape_cast %66 : vector<8x1xf32> to vector<8x1xf32>
    %68 = vector.broadcast %67 : vector<8x1xf32> to vector<8x8xf32>
    %69 = vector.broadcast %cst_16 : f32 to vector<8x8xf32>
    %70 = arith.select %56, %68, %69 : vector<8x8xi1>, vector<8x8xf32>
    %cst_17 = arith.constant 1.000000e+00 : f32
    %71 = vector.broadcast %cst_17 : f32 to vector<8x8xf32>
    %72 = arith.cmpf oeq, %62, %71 : vector<8x8xf32>
    %cst_18 = arith.constant 0.000000e+00 : f32
    %73 = vector.broadcast %cst_18 : f32 to vector<8x8xf32>
    %74 = arith.select %72, %70, %73 : vector<8x8xi1>, vector<8x8xf32>
    %cst_19 = arith.constant dense<0.000000e+00> : vector<8xf32>
    %75 = vector.multi_reduction <add>, %74, %cst_19 [0] : vector<8x8xf32> to vector<8xf32>
    %76 = vector.shape_cast %75 : vector<8xf32> to vector<1x8xf32>
    %77 = arith.addf %21, %76 : vector<1x8xf32>
    %cst_20 = arith.constant 2.000000e+00 : f32
    %78 = vector.broadcast %cst_20 : f32 to vector<8x8xf32>
    %79 = arith.cmpf oeq, %62, %78 : vector<8x8xf32>
    %cst_21 = arith.constant 0.000000e+00 : f32
    %80 = vector.broadcast %cst_21 : f32 to vector<8x8xf32>
    %81 = arith.select %79, %70, %80 : vector<8x8xi1>, vector<8x8xf32>
    %cst_22 = arith.constant dense<0.000000e+00> : vector<8xf32>
    %82 = vector.multi_reduction <add>, %81, %cst_22 [0] : vector<8x8xf32> to vector<8xf32>
    %83 = vector.shape_cast %82 : vector<8xf32> to vector<1x8xf32>
    %84 = arith.addf %22, %83 : vector<1x8xf32>
    %cst_23 = arith.constant 3.000000e+00 : f32
    %85 = vector.broadcast %cst_23 : f32 to vector<8x8xf32>
    %86 = arith.cmpf oeq, %62, %85 : vector<8x8xf32>
    %cst_24 = arith.constant 0.000000e+00 : f32
    %87 = vector.broadcast %cst_24 : f32 to vector<8x8xf32>
    %88 = arith.select %86, %70, %87 : vector<8x8xi1>, vector<8x8xf32>
    %cst_25 = arith.constant dense<0.000000e+00> : vector<8xf32>
    %89 = vector.multi_reduction <add>, %88, %cst_25 [0] : vector<8x8xf32> to vector<8xf32>
    %90 = vector.shape_cast %89 : vector<8xf32> to vector<1x8xf32>
    %91 = arith.addf %23, %90 : vector<1x8xf32>
    %cst_26 = arith.constant 4.000000e+00 : f32
    %92 = vector.broadcast %cst_26 : f32 to vector<8x8xf32>
    %93 = arith.cmpf oeq, %62, %92 : vector<8x8xf32>
    %cst_27 = arith.constant 0.000000e+00 : f32
    %94 = vector.broadcast %cst_27 : f32 to vector<8x8xf32>
    %95 = arith.select %93, %70, %94 : vector<8x8xi1>, vector<8x8xf32>
    %cst_28 = arith.constant dense<0.000000e+00> : vector<8xf32>
    %96 = vector.multi_reduction <add>, %95, %cst_28 [0] : vector<8x8xf32> to vector<8xf32>
    %97 = vector.shape_cast %96 : vector<8xf32> to vector<1x8xf32>
    %98 = arith.addf %24, %97 : vector<1x8xf32>
    %99 = tpu.concatenate %77, %84, %91, %98 in 0 : vector<1x8xf32>, vector<1x8xf32>, vector<1x8xf32>, vector<1x8xf32> -> vector<4x8xf32>
    %100 = arith.fptosi %99 : vector<4x8xf32> to vector<4x8xi32>
    %c1_i32_29 = arith.constant 1 : i32
    %101 = vector.broadcast %c1_i32_29 : i32 to vector<4x8xi32>
    %102 = arith.subi %100, %101 : vector<4x8xi32>
    %c0_30 = arith.constant 0 : index
    %c0_31 = arith.constant 0 : index
    %c0_32 = arith.constant 0 : index
    %103 = vector.load %arg6[%c0_30, %c0_31, %c0_32] : memref<1x4x8xi32, #tpu.memory_space<vmem>>, vector<1x4x8xi32>
    %104 = vector.shape_cast %103 : vector<1x4x8xi32> to vector<4x8xi32>
    %105 = vector.shape_cast %102 : vector<4x8xi32> to vector<1x4x8xi32>
    tpu.vector_store %arg6[%c0_30, %c0_31, %c0_32], %105 {strides = array<i32>} : memref<1x4x8xi32, #tpu.memory_space<vmem>>, vector<1x4x8xi32>,
    return
  }
  func.func @transform_0(%arg0: i32, %arg1: i32) -> (i32, i32, i32) {
    %c0_i32 = arith.constant 0 : i32
    %c0_i32_0 = arith.constant 0 : i32
    return %arg0, %arg1, %c0_i32 : i32, i32, i32
  }
  func.func @transform_1(%arg0: i32, %arg1: i32) -> (i32, i32, i32) {
    %c0_i32 = arith.constant 0 : i32
    %c0_i32_0 = arith.constant 0 : i32
    %c0_i32_1 = arith.constant 0 : i32
    return %arg0, %c0_i32, %c0_i32_0 : i32, i32, i32
  }
  func.func @transform_2(%arg0: i32, %arg1: i32) -> (i32, i32) {
    %c0_i32 = arith.constant 0 : i32
    %c0_i32_0 = arith.constant 0 : i32
    %c0_i32_1 = arith.constant 0 : i32
    return %c0_i32, %c0_i32_0 : i32, i32
  }
  func.func @transform_3(%arg0: i32, %arg1: i32) -> (i32, i32) {
    %c0_i32 = arith.constant 0 : i32
    %c0_i32_0 = arith.constant 0 : i32
    %c0_i32_1 = arith.constant 0 : i32
    return %c0_i32, %c0_i32_0 : i32, i32
  }
  func.func @transform_4(%arg0: i32, %arg1: i32) -> (i32, i32, i32) {
    %c0_i32 = arith.constant 0 : i32
    %c0_i32_0 = arith.constant 0 : i32
    return %arg0, %c0_i32, %arg1 : i32, i32, i32
  }
}

module attributes {stable_mosaic.version = 11 : i64} {
  func.func @_candidate_kernel(%arg0: i32, %arg1: i32, %arg2: memref<1x8x8xf32, #tpu.memory_space<vmem>>, %arg3: memref<1x8x8xf32, #tpu.memory_space<vmem>>, %arg4: memref<8x4xf32, #tpu.memory_space<vmem>>, %arg5: memref<1x4xf32, #tpu.memory_space<vmem>>, %arg6: memref<1x4x8xi32, #tpu.memory_space<vmem>>, %arg7: memref<8x4xf32, #tpu.memory_space<vmem>>) attributes {dimension_semantics = [#tpu.dimension_semantics<parallel>, #tpu.dimension_semantics<arbitrary>], iteration_bounds = array<i64: 2, 1>, scalar_prefetch = 0 : i64, scratch_operands = 1 : i64, tpu.core_type = #tpu.core_type<tc>, window_params = [{transform_indices = @transform_0, window_bounds = array<i64: 1, 8, 8>}, {transform_indices = @transform_1, window_bounds = array<i64: 1, 8, 8>}, {pipeline_mode = #tpu.pipeline_mode<synchronous>, transform_indices = @transform_2, window_bounds = array<i64: 8, 4>}, {pipeline_mode = #tpu.pipeline_mode<synchronous>, transform_indices = @transform_3, window_bounds = array<i64: 1, 4>}, {transform_indices = @transform_4, window_bounds = array<i64: 1, 4, 8>}]} {
    %c0 = arith.constant 0 : index
    %c0_0 = arith.constant 0 : index
    %0 = vector.load %arg4[%c0, %c0_0] : memref<8x4xf32, #tpu.memory_space<vmem>>, vector<8x4xf32>
    %c0_1 = arith.constant 0 : index
    %c0_2 = arith.constant 0 : index
    %1 = vector.load %arg5[%c0_1, %c0_2] : memref<1x4xf32, #tpu.memory_space<vmem>>, vector<1x4xf32>
    %c0_i32 = arith.constant 0 : i32
    %2 = arith.cmpi eq, %arg1, %c0_i32 : i32
    %3 = arith.extui %2 : i1 to i32
    %c0_i32_3 = arith.constant 0 : i32
    %4 = arith.cmpi ne, %3, %c0_i32_3 : i32
    scf.if %4 {
      %c0_33 = arith.constant 0 : index
      %c0_34 = arith.constant 0 : index
      %c0_35 = arith.constant 0 : index
      %106 = vector.load %arg3[%c0_33, %c0_34, %c0_35] : memref<1x8x8xf32, #tpu.memory_space<vmem>>, vector<1x8x8xf32>
      %107 = vector.shape_cast %106 : vector<1x8x8xf32> to vector<8x8xf32>
      %cst_36 = arith.constant 0.000000e+00 : f32
      %108 = vector.broadcast %cst_36 : f32 to vector<8x8xf32>
      %109 = arith.cmpf ogt, %107, %108 : vector<8x8xf32>
      %110 = arith.extui %109 : vector<8x8xi1> to vector<8x8xi32>
      %111 = arith.sitofp %110 : vector<8x8xi32> to vector<8x8xf32>
      %cst_37 = arith.constant dense<0.000000e+00> : vector<8x4xf32>
      %112 = tpu.matmul %111, %0, %cst_37 {dimension_numbers = #tpu.dot_dimension_numbers<[1], [0], [0], [1], [0, 0, 1, 1], [], []>} : vector<8x8xf32>, vector<8x4xf32>, vector<8x4xf32> -> vector<8x4xf32>
      %113 = vector.broadcast %1 : vector<1x4xf32> to vector<8x4xf32>
      %114 = arith.addf %112, %113 : vector<8x4xf32>
      %c0_38 = arith.constant 0 : index
      %c0_39 = arith.constant 0 : index
      %115 = vector.load %arg7[%c0_38, %c0_39] : memref<8x4xf32, #tpu.memory_space<vmem>>, vector<8x4xf32>
      tpu.vector_store %arg7[%c0_38, %c0_39], %114 {strides = array<i32>} : memref<8x4xf32, #tpu.memory_space<vmem>>, vector<8x4xf32>,
    } else {
    }
    %c0_4 = arith.constant 0 : index
    %c0_5 = arith.constant 0 : index
    %c0_6 = arith.constant 0 : index
    %5 = vector.load %arg2[%c0_4, %c0_5, %c0_6] : memref<1x8x8xf32, #tpu.memory_space<vmem>>, vector<1x8x8xf32>
    %6 = vector.shape_cast %5 : vector<1x8x8xf32> to vector<8x8xf32>
    %cst = arith.constant 0.000000e+00 : f32
    %7 = vector.broadcast %cst : f32 to vector<8x8xf32>
    %8 = arith.cmpf ogt, %6, %7 : vector<8x8xf32>
    %9 = arith.extui %8 : vector<8x8xi1> to vector<8x8xi32>
    %10 = arith.sitofp %9 : vector<8x8xi32> to vector<8x8xf32>
    %cst_7 = arith.constant dense<0.000000e+00> : vector<8x4xf32>
    %11 = tpu.matmul %10, %0, %cst_7 {dimension_numbers = #tpu.dot_dimension_numbers<[1], [0], [0], [1], [0, 0, 1, 1], [], []>} : vector<8x8xf32>, vector<8x4xf32>, vector<8x4xf32> -> vector<8x4xf32>
    %12 = vector.broadcast %1 : vector<1x4xf32> to vector<8x4xf32>
    %13 = arith.addf %11, %12 : vector<8x4xf32>
    %14 = tpu.iota {dimensions = array<i32: 0>} : vector<8x8xi32>
    %15 = tpu.iota {dimensions = array<i32: 1>} : vector<8x8xi32>
    %16 = arith.cmpi sge, %14, %15 : vector<8x8xi32>
    %17 = arith.extui %16 : vector<8x8xi1> to vector<8x8xi32>
    %18 = arith.sitofp %17 : vector<8x8xi32> to vector<8x8xf32>
    %19 = arith.truncf %18 : vector<8x8xf32> to vector<8x8xbf16>
    %cst_8 = arith.constant 0.000000e+00 : f32
    %20 = vector.broadcast %cst_8 : f32 to vector<1x8xf32>
    %cst_9 = arith.constant 0.000000e+00 : f32
    %21 = vector.broadcast %cst_9 : f32 to vector<1x8xf32>
    %cst_10 = arith.constant 0.000000e+00 : f32
    %22 = vector.broadcast %cst_10 : f32 to vector<1x8xf32>
    %cst_11 = arith.constant 0.000000e+00 : f32
    %23 = vector.broadcast %cst_11 : f32 to vector<1x8xf32>
    %cst_12 = arith.constant 0.000000e+00 : f32
    %24 = vector.broadcast %cst_12 : f32 to vector<1x8xf32>
    %c0_13 = arith.constant 0 : index
    %c0_14 = arith.constant 0 : index
    %25 = vector.load %arg7[%c0_13, %c0_14] : memref<8x4xf32, #tpu.memory_space<vmem>>, vector<8x4xf32>
    %26 = vector.extract_strided_slice %25 {offsets = [0, 0], sizes = [8, 1], strides = [1, 1]} : vector<8x4xf32> to vector<8x1xf32>
    %27 = vector.extract_strided_slice %13 {offsets = [0, 0], sizes = [8, 1], strides = [1, 1]} : vector<8x4xf32> to vector<8x1xf32>
    %28 = vector.shape_cast %27 : vector<8x1xf32> to vector<8xf32>
    %29 = vector.shape_cast %28 : vector<8xf32> to vector<1x8xf32>
    %30 = vector.broadcast %26 : vector<8x1xf32> to vector<8x8xf32>
    %31 = vector.broadcast %29 : vector<1x8xf32> to vector<8x8xf32>
    %32 = arith.cmpf oeq, %30, %31 : vector<8x8xf32>
    %33 = vector.extract_strided_slice %25 {offsets = [0, 1], sizes = [8, 1], strides = [1, 1]} : vector<8x4xf32> to vector<8x1xf32>
    %34 = vector.extract_strided_slice %13 {offsets = [0, 1], sizes = [8, 1], strides = [1, 1]} : vector<8x4xf32> to vector<8x1xf32>
    %35 = vector.shape_cast %34 : vector<8x1xf32> to vector<8xf32>
    %36 = vector.shape_cast %35 : vector<8xf32> to vector<1x8xf32>
    %37 = vector.broadcast %33 : vector<8x1xf32> to vector<8x8xf32>
    %38 = vector.broadcast %36 : vector<1x8xf32> to vector<8x8xf32>
    %39 = arith.cmpf oeq, %37, %38 : vector<8x8xf32>
    %40 = arith.andi %32, %39 : vector<8x8xi1>
    %41 = vector.extract_strided_slice %25 {offsets = [0, 2], sizes = [8, 1], strides = [1, 1]} : vector<8x4xf32> to vector<8x1xf32>
    %42 = vector.extract_strided_slice %13 {offsets = [0, 2], sizes = [8, 1], strides = [1, 1]} : vector<8x4xf32> to vector<8x1xf32>
    %43 = vector.shape_cast %42 : vector<8x1xf32> to vector<8xf32>
    %44 = vector.shape_cast %43 : vector<8xf32> to vector<1x8xf32>
    %45 = vector.broadcast %41 : vector<8x1xf32> to vector<8x8xf32>
    %46 = vector.broadcast %44 : vector<1x8xf32> to vector<8x8xf32>
    %47 = arith.cmpf oeq, %45, %46 : vector<8x8xf32>
    %48 = arith.andi %40, %47 : vector<8x8xi1>
    %49 = vector.extract_strided_slice %25 {offsets = [0, 3], sizes = [8, 1], strides = [1, 1]} : vector<8x4xf32> to vector<8x1xf32>
    %50 = vector.extract_strided_slice %13 {offsets = [0, 3], sizes = [8, 1], strides = [1, 1]} : vector<8x4xf32> to vector<8x1xf32>
    %51 = vector.shape_cast %50 : vector<8x1xf32> to vector<8xf32>
    %52 = vector.shape_cast %51 : vector<8xf32> to vector<1x8xf32>
    %53 = vector.broadcast %49 : vector<8x1xf32> to vector<8x8xf32>
    %54 = vector.broadcast %52 : vector<1x8xf32> to vector<8x8xf32>
    %55 = arith.cmpf oeq, %53, %54 : vector<8x8xf32>
    %56 = arith.andi %48, %55 : vector<8x8xi1>
    %57 = arith.extui %56 : vector<8x8xi1> to vector<8x8xi32>
    %58 = arith.sitofp %57 : vector<8x8xi32> to vector<8x8xf32>
    %59 = arith.truncf %58 : vector<8x8xf32> to vector<8x8xbf16>
    %cst_15 = arith.constant dense<0.000000e+00> : vector<8x8xf32>
    %60 = tpu.matmul %19, %59, %cst_15 {dimension_numbers = #tpu.dot_dimension_numbers<[1], [0], [0], [1], [0, 0, 1, 1], [], []>} : vector<8x8xbf16>, vector<8x8xbf16>, vector<8x8xf32> -> vector<8x8xf32>
    %61 = vector.broadcast %20 : vector<1x8xf32> to vector<8x8xf32>
    %62 = arith.addf %60, %61 : vector<8x8xf32>
    %63 = tpu.iota {dimensions = array<i32: 0>} : vector<8x1xi32>
    %c1_i32 = arith.constant 1 : i32
    %64 = vector.broadcast %c1_i32 : i32 to vector<8x1xi32>
    %65 = arith.addi %63, %64 : vector<8x1xi32>
    %66 = arith.sitofp %65 : vector<8x1xi32> to vector<8x1xf32>
    %cst_16 = arith.constant 0.000000e+00 : f32
    %67 = vector.shape_cast %66 : vector<8x1xf32> to vector<8x1xf32>
    %68 = vector.broadcast %67 : vector<8x1xf32> to vector<8x8xf32>
    %69 = vector.broadcast %cst_16 : f32 to vector<8x8xf32>
    %70 = arith.select %56, %68, %69 : vector<8x8xi1>, vector<8x8xf32>
    %cst_17 = arith.constant 1.000000e+00 : f32
    %71 = vector.broadcast %cst_17 : f32 to vector<8x8xf32>
    %72 = arith.cmpf oeq, %62, %71 : vector<8x8xf32>
    %cst_18 = arith.constant 0.000000e+00 : f32
    %73 = vector.broadcast %cst_18 : f32 to vector<8x8xf32>
    %74 = arith.select %72, %70, %73 : vector<8x8xi1>, vector<8x8xf32>
    %cst_19 = arith.constant dense<0.000000e+00> : vector<8xf32>
    %75 = vector.multi_reduction <add>, %74, %cst_19 [0] : vector<8x8xf32> to vector<8xf32>
    %76 = vector.shape_cast %75 : vector<8xf32> to vector<1x8xf32>
    %77 = arith.addf %21, %76 : vector<1x8xf32>
    %cst_20 = arith.constant 2.000000e+00 : f32
    %78 = vector.broadcast %cst_20 : f32 to vector<8x8xf32>
    %79 = arith.cmpf oeq, %62, %78 : vector<8x8xf32>
    %cst_21 = arith.constant 0.000000e+00 : f32
    %80 = vector.broadcast %cst_21 : f32 to vector<8x8xf32>
    %81 = arith.select %79, %70, %80 : vector<8x8xi1>, vector<8x8xf32>
    %cst_22 = arith.constant dense<0.000000e+00> : vector<8xf32>
    %82 = vector.multi_reduction <add>, %81, %cst_22 [0] : vector<8x8xf32> to vector<8xf32>
    %83 = vector.shape_cast %82 : vector<8xf32> to vector<1x8xf32>
    %84 = arith.addf %22, %83 : vector<1x8xf32>
    %cst_23 = arith.constant 3.000000e+00 : f32
    %85 = vector.broadcast %cst_23 : f32 to vector<8x8xf32>
    %86 = arith.cmpf oeq, %62, %85 : vector<8x8xf32>
    %cst_24 = arith.constant 0.000000e+00 : f32
    %87 = vector.broadcast %cst_24 : f32 to vector<8x8xf32>
    %88 = arith.select %86, %70, %87 : vector<8x8xi1>, vector<8x8xf32>
    %cst_25 = arith.constant dense<0.000000e+00> : vector<8xf32>
    %89 = vector.multi_reduction <add>, %88, %cst_25 [0] : vector<8x8xf32> to vector<8xf32>
    %90 = vector.shape_cast %89 : vector<8xf32> to vector<1x8xf32>
    %91 = arith.addf %23, %90 : vector<1x8xf32>
    %cst_26 = arith.constant 4.000000e+00 : f32
    %92 = vector.broadcast %cst_26 : f32 to vector<8x8xf32>
    %93 = arith.cmpf oeq, %62, %92 : vector<8x8xf32>
    %cst_27 = arith.constant 0.000000e+00 : f32
    %94 = vector.broadcast %cst_27 : f32 to vector<8x8xf32>
    %95 = arith.select %93, %70, %94 : vector<8x8xi1>, vector<8x8xf32>
    %cst_28 = arith.constant dense<0.000000e+00> : vector<8xf32>
    %96 = vector.multi_reduction <add>, %95, %cst_28 [0] : vector<8x8xf32> to vector<8xf32>
    %97 = vector.shape_cast %96 : vector<8xf32> to vector<1x8xf32>
    %98 = arith.addf %24, %97 : vector<1x8xf32>
    %99 = tpu.concatenate %77, %84, %91, %98 in 0 : vector<1x8xf32>, vector<1x8xf32>, vector<1x8xf32>, vector<1x8xf32> -> vector<4x8xf32>
    %100 = arith.fptosi %99 : vector<4x8xf32> to vector<4x8xi32>
    %c1_i32_29 = arith.constant 1 : i32
    %101 = vector.broadcast %c1_i32_29 : i32 to vector<4x8xi32>
    %102 = arith.subi %100, %101 : vector<4x8xi32>
    %c0_30 = arith.constant 0 : index
    %c0_31 = arith.constant 0 : index
    %c0_32 = arith.constant 0 : index
    %103 = vector.load %arg6[%c0_30, %c0_31, %c0_32] : memref<1x4x8xi32, #tpu.memory_space<vmem>>, vector<1x4x8xi32>
    %104 = vector.shape_cast %103 : vector<1x4x8xi32> to vector<4x8xi32>
    %105 = vector.shape_cast %102 : vector<4x8xi32> to vector<1x4x8xi32>
    tpu.vector_store %arg6[%c0_30, %c0_31, %c0_32], %105 {strides = array<i32>} : memref<1x4x8xi32, #tpu.memory_space<vmem>>, vector<1x4x8xi32>,
    return
  }
  func.func @transform_0(%arg0: i32, %arg1: i32) -> (i32, i32, i32) {
    %c0_i32 = arith.constant 0 : i32
    %c0_i32_0 = arith.constant 0 : i32
    return %arg0, %arg1, %c0_i32 : i32, i32, i32
  }
  func.func @transform_1(%arg0: i32, %arg1: i32) -> (i32, i32, i32) {
    %c0_i32 = arith.constant 0 : i32
    %c0_i32_0 = arith.constant 0 : i32
    %c0_i32_1 = arith.constant 0 : i32
    return %arg0, %c0_i32, %c0_i32_0 : i32, i32, i32
  }
  func.func @transform_2(%arg0: i32, %arg1: i32) -> (i32, i32) {
    %c0_i32 = arith.constant 0 : i32
    %c0_i32_0 = arith.constant 0 : i32
    %c0_i32_1 = arith.constant 0 : i32
    return %c0_i32, %c0_i32_0 : i32, i32
  }
  func.func @transform_3(%arg0: i32, %arg1: i32) -> (i32, i32) {
    %c0_i32 = arith.constant 0 : i32
    %c0_i32_0 = arith.constant 0 : i32
    %c0_i32_1 = arith.constant 0 : i32
    return %c0_i32, %c0_i32_0 : i32, i32
  }
  func.func @transform_4(%arg0: i32, %arg1: i32) -> (i32, i32, i32) {
    %c0_i32 = arith.constant 0 : i32
    %c0_i32_0 = arith.constant 0 : i32
    return %arg0, %c0_i32, %arg1 : i32, i32, i32
  }
}

</mosaic_0001>

<bundles_post_ra>
// kernel: tpu_custom_call.1
= control target key start
LH: loop header
LB: loop body
LE: loop exit
PB: predicated region body
PF: predicated region fallthrough
CT: control target
= control target key end

     0   :  { %9 = vsyncpa [#allocation4], 0  ;;  %s1288_s0 = inlined_call_operand.hbm [shape: f32[2,8,8], index: 0, kind: input, shape index: {}]   ;;  %s1289_s1 = inlined_call_operand.hbm [shape: f32[2,8,8], index: 1, kind: input, shape index: {}]   ;;  %s1290_s2 = inlined_call_operand.vmem [shape: f32[8,4], index: 2, kind: input, shape index: {}]   ;;  %s1291_s3 = inlined_call_operand.vmem [shape: f32[1,4], index: 3, kind: input, shape index: {}]   ;;  %s1292_s4 = inlined_call_operand.hbm [shape: s32[2,4,8], index: 4, kind: output, shape index: {}]  }
   0x1   :  { %11 = vsyncpa [#allocation4 + $0x1], 0 }
   0x2   :  { %12 = vsyncpa [#allocation7], 0 }
   0x3   :  { %13 = vsyncpa [#allocation5], 0 }
   0x4   :  { %15 = vsyncpa [#allocation5 + $0x1], 0  ;;  %s1045_s15 = smov 0   ;;  %s1047_s16 = smov 0  }
   0x5   :  { %s1049_s17 = smov 0   ;;  %s1051_s18 = smov 0  }
   0x6   :  { %s1053_s19 = smov 0   ;;  %s1055_s20 = smov 0  }
   0x7 LB: > { %s733_s21 = sadd.s32 4294967295, %s1009_s20   ;;  %s734_s22 = sadd.s32 4294967294, %s1009_s20   ;;  %s1009_s20 = sphi %s1055_s20, %s21_s20   ;;  %s1005_s19 = sphi %s1053_s19, %s1314_s19   ;;  %s1001_s18 = sphi %s1051_s18, %s1313_s18   ;;  %s997_s17 = sphi %s1049_s17, %s1312_s17   ;;  %s993_s16 = sphi %s1047_s16, %s1311_s16   ;;  %s989_s15 = sphi %s1045_s15, %s1310_s15  }
   0x8   : > { %p55_p0 = scmp.ne.s32.totalorder %s993_s16, %s989_s15  ;;  %p56_p1 = scmp.eq.s32.totalorder %s733_s21, 0 }
   0x9   : > { %p1079_p2 = scmp.eq.s32.totalorder %s733_s21, 1  ;;  %p155_p3 = scmp.eq.s32.totalorder %s734_s22, 1 }
   0xa   : > { %p1083_p4 = por %p56_p1, %p55_p0  ;;  %p735_p5 = scmp.ge.s32.totalorder %s1009_s20, 1 }
   0xb   : > { %s1296_s23 = scalar_select %p1079_p2, 1, 0 }
   0xc   : > { %s1297_s24 = scalar_select %p1083_p4, 1, 0 }
   0xd   : > { %p1088_p6 = por %p155_p3, %p55_p0  ;;  %p162_p7 = scmp.lt.s32.totalorder %s1009_s20, 3 }
   0xe   : > { %s736_s26 = sshll.u32 %s1001_s18, 7  ;;  %s1011_s5 = smov [#allocation6]  }
   0xf   : > { %s1298_s25 = scalar_select %p1088_p6, 1, 0 }
  0x10   : > { %p1094_p8 = pnand %p735_p5, %p162_p7  ;;  %s1101_s30 = scalar_lea.hbm %s1289_s1, %s736_s26 }
  0x11   : > { %s177_s6 = sshll.u32 %s1011_s5, 4  ;;  %s33_s8 = sadd.s32 1, %s1005_s19  ;;  %s178_s6 = int_to_ptr.vmem [resolvable:$true] %s177_s6 }
  0x12   : > { %s1299_s27 = scalar_select %p1094_p8, 1, 0 }
  0x13   : > { %p786_p10 = pneg %p1094_p8  ;;  %p1113_p12 = scmp.ge.s32.totalorder %s33_s8, 2 }
  0x14   : > { %s863_s10 = scalar_lea.hbm %s1101_s30, 128  ;;  %s868_s13 = scalar_lea.hbm %s1289_s1, 256 }
  0x15   : > { %p1108_p11 = pnand %p786_p10, %p1083_p4  ;;  %p864_p13 = scmp.ne.s32.totalorder %s1101_s30, %s863_s10 }
  0x16   : > { %s1301_s9 = scalar_select %p1113_p12, 1, 0 }
  0x17   : > { %p865_p0 = pneg %p1108_p11  ;;  %p869_p5 = scmp.lt.u32.totalorder %s1101_s30, %s1289_s1 }
  0x18   : > { %p870_p7 = scmp.lt.u32.totalorder %s868_s13, %s863_s10  ;;  %p872_p9 = scmp.lt.u32.totalorder %s863_s10, %s1101_s30 }
  0x19   : > { %p866_p1 = pnand %p865_p0, %p864_p13 }
  0x1a   : > { %p871_p10 = por %p870_p7, %p869_p5 }
  0x1b   : > { %p867_p3 = pneg %p866_p1 }
  0x1c   : > { %p873_p6 = por %p872_p9, %p871_p10 }
  0x1e   : > { %p874_p4 = pnand %p873_p6, %p867_p3 }
  0x20   : > { %877 = shalt.err (!%p874_p4)
}
  0x21   : > { %s878_s22 = scalar_lea.vmem %s178_s6, 128  ;;  %p886_p2 = scmp.lt.s32.totalorder %s178_s6, %s178_s6 }
  0x22   : > { %p879_p8 = scmp.ne.s32.totalorder %s178_s6, %s878_s22  ;;  %p887_p12 = scmp.lt.s32.totalorder %s878_s22, %s878_s22 }
  0x24   : > { %p881_p13 = pnand %p879_p8, %p865_p0  ;;  %p888_p5 = por %p887_p12, %p886_p2 }
  0x26   : > { %p882_p1 = pneg %p881_p13 }
  0x28   : > { %p889_p7 = pnand %p888_p5, %p882_p1 }
  0x2a   : > { %892 = shalt.err (!%p889_p7)
}
  0x2b   : > { %789 = dma.hbm_to_vmem [thread:$0]  (!%p1108_p11), %s1101_s30, 128, %s178_s6, [#allocation7]  }
  0x2c   : > { %p1302_p4 = scmp.ne.s32.totalorder %s1301_s9, 0  ;;  %s42_s26 = sadd.s32 1, %s997_s17 }
  0x2d   : > { %p49_p2 = scmp.ne.s32.totalorder %s997_s17, %s993_s16  ;;  %p50_p6 = scmp.eq.s32.totalorder %s1009_s20, 0 }
  0x2e   : > { %s1316_s8 = smov (%p1302_p4, %s33_s8), 0  ;;  %p1303_p9 = scmp.ne.s32.totalorder %s1296_s23, 0 }
  0x2f   : > { %s37_s28 = ssub.s32 %s1005_s19, %s1316_s8  ;;  %p51_p0 = por %p50_p6, %p49_p2 }
  0x30   : > { %p40_p8 = scmp.eq.s32.totalorder %s37_s28, 0  ;;  %p1150_p12 = por %p1303_p9, %p49_p2 }
  0x31   : > { %p798_p3 = scmp.lt.s32.totalorder %s1009_s20, 2  ;;  %s194_s7 = sand.u32 1, %s997_s17  }
  0x32   : > { %s1156_s5 = scalar_select %p40_p8, %s997_s17, %s42_s26  }
  0x33   : > { %s739_s30 = sshll.u32 %s1005_s19, 7  ;;  %s738_s6 = sshll.u32 %s194_s7, 3 }
  0x34   : > { %s1163_s11 = scalar_lea.hbm %s1288_s0, %s739_s30  ;;  %s198_s23 = scalar_lea.vmem [#allocation3], %s738_s6 }
  0x35   : > { %s206_s12 = sshll.u32 %s198_s23, 4  ;;  %p1165_p11 = pnand %p798_p3, %p51_p0  ;;  %s1169_s12 = int_to_ptr.vmem [resolvable:$true] %s206_s12 }
  0x36   : > { %s195_s14 = scalar_lea.sflag [#allocation4], %s194_s7  ;;  %s893_s21 = scalar_lea.hbm %s1163_s11, 128 }
  0x37   : > { %p894_p10 = scmp.ne.s32.totalorder %s1163_s11, %s893_s21  ;;  %p895_p13 = pneg %p1165_p11 }
  0x38   : > { %s898_s28 = scalar_lea.hbm %s1288_s0, 256  ;;  %p899_p7 = scmp.lt.u32.totalorder %s1163_s11, %s1288_s0 }
  0x39   : > { %p896_p1 = pnand %p895_p13, %p894_p10  ;;  %p900_p4 = scmp.lt.u32.totalorder %s898_s28, %s893_s21 }
  0x3a   : > { %p902_p6 = scmp.lt.u32.totalorder %s893_s21, %s1163_s11 }
  0x3b   : > { %p897_p5 = pneg %p896_p1  ;;  %p901_p2 = por %p900_p4, %p899_p7 }
  0x3d   : > { %p903_p8 = por %p902_p6, %p901_p2 }
  0x3f   : > { %p904_p9 = pnand %p903_p8, %p897_p5 }
  0x41   : > { %907 = shalt.err (!%p904_p9)
}
  0x42   : > { %s908_s7 = scalar_lea.vmem %s1169_s12, 128  ;;  %s1012_s9 = smov [#allocation3]  }
  0x43   : > { %p909_p0 = scmp.ne.s32.totalorder %s1169_s12, %s908_s7  ;;  %s913_s10 = sshll.u32 %s1012_s9, 4  ;;  %s914_s10 = int_to_ptr.vmem [resolvable:$false] %s913_s10 }
  0x44   : > { %s915_s23 = scalar_lea.vmem %s914_s10, 256  ;;  %p916_p1 = scmp.lt.s32.totalorder %s1169_s12, %s914_s10 }
  0x45   : > { %p911_p3 = pnand %p909_p0, %p895_p13  ;;  %p917_p7 = scmp.lt.s32.totalorder %s915_s23, %s908_s7 }
  0x47   : > { %p912_p10 = pneg %p911_p3  ;;  %p918_p4 = por %p917_p7, %p916_p1 }
  0x49   : > { %p919_p2 = pnand %p918_p4, %p912_p10 }
  0x4b   : > { %922 = shalt.err (!%p919_p2)
}
  0x4c   : > { %793 = dma.hbm_to_vmem [thread:$0]  (!%p1165_p11), %s1163_s11, 128, %s1169_s12, %s195_s14  }
  0x4d   : > { %p1306_p5 = scmp.ne.s32.totalorder %s1299_s27, 0 }
  0x4e   : > { %s1199_s21 = sand.u32 (!%p1306_p5), 1, %s993_s16   ;;  %p1307_p13 = scmp.ne.s32.totalorder (!%p1306_p5), %s1297_s24, 0 }
  0x4f   : > { %215 = sbr.rel (%p1306_p5) target bundleno = 718 (0x2ce), region = 36  ;;  %s741_s22 = sshll.u32 (!%p1306_p5), %s1199_s21, 3 }
  0x50   : > { %s218_s26 = scalar_lea.sflag (!%p1306_p5), [#allocation4], %s1199_s21  ;;  %s221_s28 = scalar_lea.vmem (!%p1306_p5), [#allocation3], %s741_s22 }
  0x56   : > { %976 = dma.done.wait (%p1307_p13), %s218_s26, 128  }
  0x57   : > { %978 = vsyncadd (%p1307_p13), %s218_s26, 4294967168 }
  0x58   : > { %980 = dma.done.wait (%p1307_p13), [#allocation7], 128  }
  0x59   : > { %982 = vsyncadd (%p1307_p13), [#allocation7], 4294967168  ;;  %v1013_v0 = vmov 0.0   ;;  %vm1014_vm0 = vmmov 0   ;;  %v251_v1 = vld [vmem:[%s1290_s2] sm:$0xff]  ;;  %v257_v2 = vld [vmem:[#allocation6] sm:$0xff]  ;;  %v262_v19 = vlaneseq }
  0x5a   : > { %762 = vmatprep.subr.mxu1 %v1013_v0  ;;  %764 = vmatprep.mubr.msk.f32.mxu1 %vm1014_vm0, %v1013_v0  ;;  %vm267_vm1 = vcmask 64512   ;;  %v343_v3 = vld [vmem:[%s221_s28] sm:$0xff]  ;;  %vm258_vm2 = vcmp.gt.f32.partialorder %v257_v2, 0.0  ;;  %v1015_v6 = vmov 2   ;;  %v1016_v7 = vmov 0   ;;  %s742_s13 = sshll.u32 %s1199_s21, 2 }
  0x5b   : > { %772 = vmatprep.subr.bf16.mxu0 %v1013_v0  ;;  %774 = vmatprep.mubr.msk.bf16.mxu0 %vm1014_vm0, %v1013_v0  ;;  %vm344_vm3 = vcmp.gt.f32.partialorder %v343_v3, 0.0  ;;  %v743_v4 = vsel %vm258_vm2, 1.0, %v1013_v0  ;;  %v755_v8 = vld [vmem:[%s1291_s3] ss:$0 sm:$0xff]  ;;  %vm341_vm4 = vcmask 31744   ;;  %v1017_v16 = vmov 1  }
  0x5c   : > { %763 = vmatpush3.msra.mxu1 %v251_v1  ;;  %v745_v5 = vsel %vm344_vm3, 1.0, %v1013_v0  ;;  %857 = vset.pattern.permute.xlu1 %v1015_v6  ;;  %v1018_v17 = vmov 3   ;;  %v263_v22 = vshrl.u32 %v262_v19, 7  ;;  %v430_v23 = vand.u32 127, %v262_v19  ;;  %s752_s14 = sshll.u32 %s1001_s18, 6  ;;  %s249_s30 = scalar_lea.vmem [#allocation8], %s742_s13 }
  0x5d   : > { %767 = vmatprep.subr.mxu1 %v1013_v0  ;;  %765 = vmatmul.mubr.msk.f32.vlgmr.msra.gmra.mrb[0].mxu1 %vm267_vm1, %v743_v4  ;;  %vm529_vm13 = vcmask 1043456   ;;  %vm618_vm3 = vcmask 1041408   ;;  %s641_s6 = sshll.u32 %s249_s30, 4  ;;  %s1239_s10 = scalar_lea.hbm %s1292_s4, %s752_s14  ;;  %s1241_s6 = int_to_ptr.vmem [resolvable:$true] %s641_s6 }
  0x5e   : > { %768 = vmatpush3.msra.mxu1 %v251_v1  ;;  %769 = vmatprep.mubr.msk.f32.mxu1 %vm1014_vm0, %v1013_v0  ;;  %v447_v26 = vsub.s32 %v430_v23, %v263_v22  ;;  %vm431_vm9 = vcmp.ge.s32.totalorder %v263_v22, %v430_v23  ;;  %v573_v39 = vadd.s32 1, %v263_v22  ;;  %s627_s23 = scalar_lea.sflag [#allocation5], %s1199_s21  ;;  %s923_s22 = scalar_lea.vmem %s1241_s6, 64 }
  0x5f   : > { %855 = vset.pattern.permute.xlu0 %v1016_v7  ;;  %v747_v35 = vsel %vm431_vm9, 1.0, %v1013_v0  ;;  %p924_p11 = scmp.ne.s32.totalorder %s1241_s6, %s923_s22  ;;  %s1019_s18 = smov [#allocation8]  }
  0x60   : > { %v434_v38 = vpack.c.bf16 %v747_v35, %v747_v35  ;;  %v574_v40 = vcvt.s32.f32 %v573_v39  ;;  %s927_s26 = sshll.u32 %s1019_s18, 4  ;;  %s928_s26 = int_to_ptr.vmem [resolvable:$false] %s927_s26 }
  0x61   : > { %770 = vmatmul.mubr.msk.f32.vlgmr.msra.gmra.mrb[2].mxu1 %vm267_vm1, %v745_v5  ;;  %p925_p6 = pnand %p924_p11, %p1150_p12  ;;  %s929_s28 = scalar_lea.vmem %s928_s26, 128 }
  0x62   : > { %p930_p9 = scmp.lt.s32.totalorder %s1241_s6, %s928_s26  ;;  %p931_p0 = scmp.lt.s32.totalorder %s929_s28, %s923_s22 }
  0x63   : > { %p926_p8 = pneg %p925_p6 }
  0x64   : > { %p932_p3 = por %p931_p0, %p930_p9 }
  0x66   : > { %p933_p10 = pnand %p932_p3, %p926_p8 }
 0x130   : > { %v337_v9 = vpop.f32.mrb[0].mxu1 }
 0x131   : > { %v338_v10 = vadd.f32 %v755_v8, %v337_v9  ;;  %v766_v11 = vpop.f32.mrb[1].mxu1 }
 0x133   : > { %342 = vst.msk [vmem:[#allocation2] sm:$0xff] %vm341_vm4, %v338_v10  ;;  %vm620_vm4 = vcmask 1042432  }
 0x134   : > { %v423_v12 = vpop.f32.mrb[2].mxu1 }
 0x135   : > { %v424_v13 = vadd.f32 %v755_v8, %v423_v12  ;;  %v771_v14 = vpop.f32.mrb[3].mxu1 }
 0x137   : > { %488 = vperm.xlu1 %857, %v424_v13   ;;  %443 = vperm.xlu0 %855, %v424_v13  }
 0x13a   : > { %v435_v15 = vld [vmem:[#allocation2] sm:$0xff] }
 0x13b   : > { %858 = vset.pattern.permute.xlu1 %v1016_v7  ;;  %856 = vset.pattern.permute.xlu0 %v1017_v16 }
 0x13c   : > { %438 = vperm.xlu1 %858, %v435_v15   ;;  %468 = vperm.xlu0 %856, %v424_v13  }
 0x140   : > { %859 = vset.pattern.permute.xlu1 %v1017_v16  ;;  %860 = vset.pattern.permute.xlu0 %v1018_v17 }
 0x141   : > { %464 = vperm.xlu1 %859, %v435_v15   ;;  %508 = vperm.xlu0 %860, %v424_v13  }
 0x145   : > { %861 = vset.pattern.permute.xlu1 %v1015_v6 }
 0x146   : > { %484 = vperm.xlu1 %861, %v435_v15  }
 0x14a   : > { %862 = vset.pattern.permute.xlu1 %v1018_v17 }
 0x14b   : > { %504 = vperm.xlu1 %862, %v435_v15  }
 0x1b6   : > { %v489_v18 = vpop.permute.xlu1 %488  ;;  %v444_v20 = vpop.permute.xlu0 %443 }
 0x1b7   : > { %v493_v29 = vrot.slane %v489_v18, %v447_v26  ;;  %v448_v31 = vrot.slane %v444_v20, %v447_v26 }
 0x1bb   : > { %v439_v21 = vpop.permute.xlu1 %438  ;;  %v469_v24 = vpop.permute.xlu0 %468 }
 0x1bc   : > { %v473_v27 = vrot.slane %v469_v24, %v447_v26  ;;  %vm462_vm7 = vcmp.eq.f32.partialorder %v439_v21, %v448_v31 }
 0x1c0   : > { %v465_v25 = vpop.permute.xlu1 %464  ;;  %v509_v30 = vpop.permute.xlu0 %508 }
 0x1c1   : > { %vm481_vm5 = vcmp.eq.f32.partialorder %v465_v25, %v473_v27  ;;  %v513_v32 = vrot.slane %v509_v30, %v447_v26 }
 0x1c2   : > { %vm482_vm8 = vmand %vm462_vm7, %vm481_vm5  ;;  %vm624_vm5 = vcmask 60416  }
 0x1c5   : > { %v485_v28 = vpop.permute.xlu1 %484 }
 0x1c6   : > { %vm501_vm6 = vcmp.eq.f32.partialorder %v485_v28, %v493_v29 }
 0x1c7   : > { %vm502_vm10 = vmand %vm482_vm8, %vm501_vm6 }
 0x1ca   : > { %v505_v33 = vpop.permute.xlu1 %504 }
 0x1cb   : > { %vm521_vm11 = vcmp.eq.f32.partialorder %v505_v33, %v513_v32 }
 0x1cc   : > { %vm522_vm12 = vmand %vm502_vm10, %vm521_vm11 }
 0x1cd   : > { %v748_v34 = vsel %vm522_vm12, 1.0, %v1013_v0  ;;  %v575_v41 = vsel %vm522_vm12, %v574_v40, 0.0 }
 0x1ce   : > { %v525_v36 = vpack.c.bf16 %v748_v34, %v748_v34 }
 0x1d0   : > { %v531_v37 = vsel %vm529_vm13, %v525_v36, 0 }
 0x1d1   : > { %773 = vmatpush3.bf16.msra.mxu0 %v531_v37 }
 0x1d4   : > { %775 = vmatmul.mubr.msk.bf16.vlgmr.msra.gmra.mrb[0].mxu0 %vm267_vm1, %v434_v38 }
 0x2a7   : > { %v567_v42 = vpop.f32.mrb[0].mxu0 }
 0x2a8   : > { %vm576_vm14 = vcmp.eq.f32.partialorder %v567_v42, 1.0  ;;  %vm586_vm15 = vcmp.eq.f32.partialorder %v567_v42, 2.0  ;;  %vm596_vm0 = vcmp.eq.f32.partialorder %v567_v42, 3.0  ;;  %vm606_vm2 = vcmp.eq.f32.partialorder %v567_v42, 4.0  ;;  %v776_v43 = vpop.f32.mrb[1].mxu0 }
 0x2a9   : > { %v577_v44 = vsel %vm576_vm14, %v575_v41, 0.0  ;;  %v587_v45 = vsel %vm586_vm15, %v575_v41, 0.0  ;;  %v597_v46 = vsel %vm596_vm0, %v575_v41, 0.0  ;;  %v607_v47 = vsel %vm606_vm2, %v575_v41, 0.0  ;;  %v570_v48 = vpop.f32.mrb[2].mxu0 }
 0x2aa   : > { %v578_v49 = vsel %vm267_vm1, %v577_v44, 0.0  ;;  %v588_v50 = vsel %vm267_vm1, %v587_v45, 0.0  ;;  %v598_v51 = vsel %vm267_vm1, %v597_v46, 0.0  ;;  %v608_v52 = vsel %vm267_vm1, %v607_v47, 0.0  ;;  %v777_v53 = vpop.f32.mrb[3].mxu0 }
 0x2ab   : > { %v579_v54 = vrot.slane %v578_v49, 4  ;;  %v589_v55 = vrot.slane %v588_v50, 4  ;;  %v599_v56 = vrot.slane %v598_v51, 4  ;;  %v609_v57 = vrot.slane %v608_v52, 4 }
 0x2ac   : > { %vm616_vm1 = vcmask 1040384  }
 0x2ad   : > { %v580_v58 = vadd.f32 %v579_v54, %v578_v49  ;;  %v590_v59 = vadd.f32 %v589_v55, %v588_v50  ;;  %v600_v60 = vadd.f32 %v599_v56, %v598_v51  ;;  %v610_v61 = vadd.f32 %v609_v57, %v608_v52 }
 0x2af   : > { %v581_v62 = vrot.slane %v580_v58, 2  ;;  %v591_v63 = vrot.slane %v590_v59, 2  ;;  %v601_v0 = vrot.slane %v600_v60, 2  ;;  %v611_v1 = vrot.slane %v610_v61, 2 }
 0x2b1   : > { %v582_v2 = vadd.f32 %v581_v62, %v580_v58  ;;  %v592_v3 = vadd.f32 %v591_v63, %v590_v59  ;;  %v602_v4 = vadd.f32 %v601_v0, %v600_v60  ;;  %v612_v5 = vadd.f32 %v611_v1, %v610_v61 }
 0x2b3   : > { %v583_v6 = vrot.slane %v582_v2, 1  ;;  %v593_v7 = vrot.slane %v592_v3, 1  ;;  %v603_v8 = vrot.slane %v602_v4, 1  ;;  %v613_v9 = vrot.slane %v612_v5, 1 }
 0x2b5   : > { %v584_v10 = vadd.f32 %v583_v6, %v582_v2  ;;  %v594_v11 = vadd.f32 %v593_v7, %v592_v3  ;;  %v604_v12 = vadd.f32 %v603_v8, %v602_v4  ;;  %v614_v13 = vadd.f32 %v613_v9, %v612_v5 }
 0x2b7   : > { %v617_v14 = vsel %vm616_vm1, %v584_v10, %v594_v11 }
 0x2b8   : > { %v619_v15 = vsel %vm618_vm3, %v617_v14, %v604_v12 }
 0x2b9   : > { %v621_v16 = vsel %vm620_vm4, %v619_v15, %v614_v13 }
 0x2ba   : > { %v778_v17 = vtrunc.f32 %v621_v16 }
 0x2bc   : > { %v779_v18 = vcvt.f32.s32 %v778_v17 }
 0x2be   : > { %v750_v19 = vadd.s32 4294967295, %v779_v18 }
 0x2c0   : > { %625 = vst.msk [vmem:[%s249_s30] sm:$0xf] %vm624_vm5, %v750_v19 }
 0x2c1   : > { %936 = shalt.err (!%p933_p10)
}
 0x2c2   : > { %s937_s21 = scalar_lea.hbm %s1239_s10, 64  ;;  %s941_s24 = scalar_lea.hbm %s1292_s4, 128 }
 0x2c3   : > { %p938_p1 = scmp.ne.s32.totalorder %s1239_s10, %s937_s21  ;;  %p942_p2 = scmp.lt.u32.totalorder %s1239_s10, %s1292_s4 }
 0x2c4   : > { %p943_p5 = scmp.lt.u32.totalorder %s941_s24, %s937_s21  ;;  %p945_p11 = scmp.lt.u32.totalorder %s937_s21, %s1239_s10 }
 0x2c5   : > { %p939_p7 = pnand %p938_p1, %p1150_p12 }
 0x2c6   : > { %p944_p13 = por %p943_p5, %p942_p2 }
 0x2c7   : > { %p940_p4 = pneg %p939_p7 }
 0x2c8   : > { %p946_p6 = por %p945_p11, %p944_p13 }
 0x2ca   : > { %p947_p8 = pnand %p946_p6, %p940_p4 }
 0x2cc   : > { %950 = shalt.err (!%p947_p8)
}
 0x2cd   : > { %784 = dma.vmem_to_hbm [thread:$0]  (%p1150_p12), %s1241_s6, 64, %s1239_s10, %s627_s23  }
 0x2ce PF: > { %s653_s14 = sand.u32 1, %s989_s15   ;;  %p1308_p9 = scmp.ne.s32.totalorder %s1298_s25, 0 }
 0x2cf   : > { %p1309_p0 = scmp.ge.s32.totalorder %s1009_s20, 2  ;;  %s654_s30 = scalar_lea.sflag [#allocation5], %s653_s14 }
 0x2d1   : > { %p795_p3 = pnand %p1309_p0, %p1308_p9 }
 0x2d3   : > { %984 = dma.done.wait (!%p795_p3), %s654_s30, 64  }
 0x2d4   : > { %986 = vsyncadd (!%p795_p3), %s654_s30, 4294967232  ;;  %s21_s20 = sadd.s32 1, %s1009_s20   ;;  %s1310_s15 = smov %s993_s16 }
 0x2d5   : > { %p18_p10 = scmp.ge.s32.totalorder %s21_s20, 4   ;;  %s1311_s16 = smov %s997_s17 }
 0x2d6   : > { %s1312_s17 = smov %s1156_s5  ;;  %s1313_s18 = smov %s1005_s19 }
 0x2d7   : > { %s1314_s19 = smov %s1316_s8  ;;  %20 = sbr.rel (!%p18_p10) target bundleno = 7 (0x7), region = 90 }
 0x2de   :  { %659 = vsyncpa [#allocation4], 1 }
 0x2df   :  { %661 = vsyncpa [#allocation4 + $0x1], 1 }
 0x2e0   :  { %662 = vsyncpa [#allocation7], 1 }
 0x2e1   :  { %663 = vsyncpa [#allocation5], 1 }
 0x2e2   :  { %665 = vsyncpa [#allocation5 + $0x1], 1 }

// kernel: tpu_custom_call.1
= control target key start
LH: loop header
LB: loop body
LE: loop exit
PB: predicated region body
PF: predicated region fallthrough
CT: control target
= control target key end

     0   :  { %9 = vsyncpa [#allocation4], 0  ;;  %s1317_s0 = inlined_call_operand.hbm [shape: f32[2,8,8], index: 0, kind: input, shape index: {}]   ;;  %s1318_s1 = inlined_call_operand.hbm [shape: f32[2,8,8], index: 1, kind: input, shape index: {}]   ;;  %s1319_s2 = inlined_call_operand.vmem [shape: f32[8,4], index: 2, kind: input, shape index: {}]   ;;  %s1320_s3 = inlined_call_operand.vmem [shape: f32[1,4], index: 3, kind: input, shape index: {}]   ;;  %s1321_s4 = inlined_call_operand.hbm [shape: s32[2,4,8], index: 4, kind: output, shape index: {}]  }
   0x1   :  { %11 = vsyncpa [#allocation4 + $0x1], 0 }
   0x2   :  { %12 = vsyncpa [#allocation7], 0 }
   0x3   :  { %14 = vsyncpa [#allocation7 + $0x1], 0 }
   0x4   :  { %15 = vsyncpa [#allocation5], 0 }
   0x5   :  { %17 = vsyncpa [#allocation5 + $0x1], 0  ;;  %s1073_s15 = smov 0   ;;  %s1075_s16 = smov 0  }
   0x6   :  { %s1077_s17 = smov 0   ;;  %s1079_s18 = smov 0  }
   0x7   :  { %s1081_s19 = smov 0   ;;  %s1083_s20 = smov 0  }
   0x8 LB: > { %s761_s21 = sadd.s32 4294967295, %s1037_s20   ;;  %s762_s22 = sadd.s32 4294967294, %s1037_s20   ;;  %s1037_s20 = sphi %s1083_s20, %s23_s20   ;;  %s1033_s19 = sphi %s1081_s19, %s1341_s19   ;;  %s1029_s18 = sphi %s1079_s18, %s1340_s18   ;;  %s1025_s17 = sphi %s1077_s17, %s1339_s17   ;;  %s1021_s16 = sphi %s1075_s16, %s1338_s16   ;;  %s1017_s15 = sphi %s1073_s15, %s1337_s15  }
   0x9   : > { %s35_s23 = sadd.s32 1, %s1033_s19  ;;  %s44_s24 = sadd.s32 1, %s1025_s17 }
   0xa   : > { %p37_p0 = scmp.ge.s32.totalorder %s35_s23, 2  ;;  %p51_p1 = scmp.ne.s32.totalorder %s1025_s17, %s1021_s16 }
   0xb   : > { %p52_p2 = scmp.eq.s32.totalorder %s1037_s20, 0  ;;  %p57_p3 = scmp.ne.s32.totalorder %s1021_s16, %s1017_s15 }
   0xc   : > { %s1343_s23 = smov (%p37_p0, %s35_s23), 0  ;;  %p58_p5 = scmp.eq.s32.totalorder %s761_s21, 0 }
   0xd   : > { %p1114_p4 = por %p52_p2, %p51_p1  ;;  %s39_s26 = ssub.s32 %s1033_s19, %s1343_s23 }
   0xe   : > { %p151_p6 = scmp.eq.s32.totalorder %s761_s21, 1  ;;  %p42_p7 = scmp.eq.s32.totalorder %s39_s26, 0 }
   0xf   : > { %p1120_p8 = por %p58_p5, %p57_p3  ;;  %p157_p10 = scmp.eq.s32.totalorder %s762_s22, 1 }
  0x10   : > { %p1124_p9 = por %p151_p6, %p51_p1  ;;  %p827_p13 = scmp.lt.s32.totalorder %s1037_s20, 2 }
  0x11   : > { %s1325_s27 = scalar_select %p1120_p8, 1, 0 }
  0x12   : > { %s1326_s28 = scalar_select %p1124_p9, 1, 0 }
  0x13   : > { %s1129_s29 = scalar_select %p42_p7, %s1025_s17, %s44_s24  }
  0x14   : > { %p1131_p11 = por %p157_p10, %p57_p3  ;;  %s1138_s5 = sand.u32 1, %s1025_s17  }
  0x15   : > { %s765_s6 = sshll.u32 %s1138_s5, 3  ;;  %s766_s7 = sshll.u32 %s1033_s19, 7 }
  0x16   : > { %s1327_s30 = scalar_select %p1131_p11, 1, 0 }
  0x17   : > { %s1147_s10 = scalar_lea.hbm %s1317_s0, %s766_s7  ;;  %s187_s11 = scalar_lea.vmem [#allocation3], %s765_s6 }
  0x18   : > { %s195_s12 = sshll.u32 %s187_s11, 4  ;;  %p1155_p0 = pnand %p827_p13, %p1114_p4  ;;  %s1151_s12 = int_to_ptr.vmem [resolvable:$true] %s195_s12 }
  0x19   : > { %s184_s14 = scalar_lea.sflag [#allocation4], %s1138_s5  ;;  %s891_s21 = scalar_lea.hbm %s1147_s10, 128 }
  0x1a   : > { %p892_p3 = scmp.ne.s32.totalorder %s1147_s10, %s891_s21  ;;  %p893_p5 = pneg %p1155_p0 }
  0x1b   : > { %s896_s25 = scalar_lea.hbm %s1317_s0, 256  ;;  %p897_p4 = scmp.lt.u32.totalorder %s1147_s10, %s1317_s0 }
  0x1c   : > { %p894_p6 = pnand %p893_p5, %p892_p3  ;;  %p898_p10 = scmp.lt.u32.totalorder %s896_s25, %s891_s21 }
  0x1d   : > { %p900_p12 = scmp.lt.u32.totalorder %s891_s21, %s1147_s10 }
  0x1e   : > { %p895_p7 = pneg %p894_p6  ;;  %p899_p13 = por %p898_p10, %p897_p4 }
  0x20   : > { %p901_p1 = por %p900_p12, %p899_p13 }
  0x22   : > { %p902_p2 = pnand %p901_p1, %p895_p7 }
  0x24   : > { %905 = shalt.err (!%p902_p2)
}
  0x25   : > { %s906_s9 = scalar_lea.vmem %s1151_s12, 128  ;;  %s1039_s11 = smov [#allocation3]  }
  0x26   : > { %p907_p3 = scmp.ne.s32.totalorder %s1151_s12, %s906_s9  ;;  %s911_s22 = sshll.u32 %s1039_s11, 4  ;;  %s912_s22 = int_to_ptr.vmem [resolvable:$false] %s911_s22 }
  0x27   : > { %s913_s24 = scalar_lea.vmem %s912_s22, 256  ;;  %p914_p9 = scmp.lt.s32.totalorder %s1151_s12, %s912_s22 }
  0x28   : > { %p909_p6 = pnand %p907_p3, %p893_p5  ;;  %p915_p4 = scmp.lt.s32.totalorder %s913_s24, %s906_s9 }
  0x2a   : > { %p910_p11 = pneg %p909_p6  ;;  %p916_p10 = por %p915_p4, %p914_p9 }
  0x2c   : > { %p917_p12 = pnand %p916_p10, %p910_p11 }
  0x2e   : > { %920 = shalt.err (!%p917_p12)
}
  0x2f   : > { %819 = dma.hbm_to_vmem [thread:$0]  (!%p1155_p0), %s1147_s10, 128, %s1151_s12, %s184_s14  }
  0x30   : > { %p1329_p1 = scmp.lt.s32.totalorder %s1037_s20, 3  ;;  %p1330_p2 = scmp.ge.s32.totalorder %s1037_s20, 1 }
  0x31   : > { %s1200_s8 = scalar_lea.hbm %s1318_s1, %s766_s7  ;;  %s206_s9 = scalar_lea.vmem [#allocation6], %s765_s6 }
  0x32   : > { %p1191_p7 = pnand %p1330_p2, %p1329_p1  ;;  %s213_s11 = sshll.u32 %s206_s9, 4  ;;  %s214_s11 = int_to_ptr.vmem [resolvable:$true] %s213_s11 }
  0x33   : > { %s203_s10 = scalar_lea.sflag [#allocation7], %s1138_s5  ;;  %s921_s12 = scalar_lea.hbm %s1200_s8, 128 }
  0x34   : > { %s1331_s21 = scalar_select %p1191_p7, 1, 0 }
  0x35   : > { %p922_p9 = scmp.ne.s32.totalorder %s1200_s8, %s921_s12  ;;  %s926_s7 = scalar_lea.hbm %s1318_s1, 256 }
  0x36   : > { %p927_p3 = scmp.lt.u32.totalorder %s1200_s8, %s1318_s1  ;;  %p928_p6 = scmp.lt.u32.totalorder %s926_s7, %s921_s12 }
  0x37   : > { %p924_p11 = pnand %p922_p9, %p893_p5  ;;  %p930_p10 = scmp.lt.u32.totalorder %s921_s12, %s1200_s8 }
  0x38   : > { %p929_p4 = por %p928_p6, %p927_p3 }
  0x39   : > { %p925_p13 = pneg %p924_p11 }
  0x3a   : > { %p931_p12 = por %p930_p10, %p929_p4 }
  0x3c   : > { %p932_p1 = pnand %p931_p12, %p925_p13 }
  0x3e   : > { %935 = shalt.err (!%p932_p1)
}
  0x3f   : > { %s936_s5 = scalar_lea.vmem %s214_s11, 128  ;;  %s1040_s6 = smov [#allocation6]  }
  0x40   : > { %p937_p2 = scmp.ne.s32.totalorder %s214_s11, %s936_s5  ;;  %s941_s26 = sshll.u32 %s1040_s6, 4  ;;  %s942_s26 = int_to_ptr.vmem [resolvable:$false] %s941_s26 }
  0x41   : > { %s943_s9 = scalar_lea.vmem %s942_s26, 256  ;;  %p944_p8 = scmp.lt.s32.totalorder %s214_s11, %s942_s26 }
  0x42   : > { %p939_p9 = pnand %p937_p2, %p893_p5  ;;  %p945_p7 = scmp.lt.s32.totalorder %s943_s9, %s936_s5 }
  0x44   : > { %p940_p11 = pneg %p939_p9  ;;  %p946_p3 = por %p945_p7, %p944_p8 }
  0x46   : > { %p947_p6 = pnand %p946_p3, %p940_p11 }
  0x48   : > { %950 = shalt.err (!%p947_p6)
}
  0x49   : > { %822 = dma.hbm_to_vmem [thread:$0]  (!%p1155_p0), %s1200_s8, 128, %s214_s11, %s203_s10  }
  0x4a   : > { %p1332_p13 = scmp.ne.s32.totalorder %s1331_s21, 0 }
  0x4b   : > { %s1227_s12 = sand.u32 (!%p1332_p13), 1, %s1021_s16   ;;  %p1333_p5 = scmp.ne.s32.totalorder (!%p1332_p13), %s1325_s27, 0 }
  0x4c   : > { %222 = sbr.rel (%p1332_p13) target bundleno = 715 (0x2cb), region = 36  ;;  %s770_s14 = sshll.u32 (!%p1332_p13), %s1227_s12, 3 }
  0x4d   : > { %s225_s22 = scalar_lea.sflag (!%p1332_p13), [#allocation4], %s1227_s12  ;;  %s228_s7 = scalar_lea.vmem (!%p1332_p13), [#allocation3], %s770_s14 }
  0x53   : > { %1004 = dma.done.wait (%p1333_p5), %s225_s22, 128  }
  0x54   : > { %1006 = vsyncadd (%p1333_p5), %s225_s22, 4294967168  ;;  %s234_s13 = scalar_lea.sflag [#allocation7], %s1227_s12  ;;  %s237_s8 = scalar_lea.vmem [#allocation6], %s770_s14 }
  0x55   : > { %1008 = dma.done.wait (%p1333_p5), %s234_s13, 128  }
  0x56   : > { %1010 = vsyncadd (%p1333_p5), %s234_s13, 4294967168  ;;  %v1041_v0 = vmov 0.0   ;;  %vm1042_vm0 = vmmov 0   ;;  %v268_v1 = vld [vmem:[%s1319_s2] sm:$0xff]  ;;  %vm284_vm1 = vcmask 64512   ;;  %v360_v3 = vld [vmem:[%s228_s7] sm:$0xff]  ;;  %v279_v19 = vlaneseq }
  0x57   : > { %792 = vmatprep.subr.mxu1 %v1041_v0  ;;  %794 = vmatprep.mubr.msk.f32.mxu1 %vm1042_vm0, %v1041_v0  ;;  %v274_v2 = vld [vmem:[%s237_s8] sm:$0xff]  ;;  %vm361_vm3 = vcmp.gt.f32.partialorder %v360_v3, 0.0  ;;  %v1043_v6 = vmov 2   ;;  %v1044_v7 = vmov 0   ;;  %vm358_vm4 = vcmask 31744   ;;  %s772_s24 = sshll.u32 %s1227_s12, 2 }
  0x58   : > { %802 = vmatprep.subr.bf16.mxu0 %v1041_v0  ;;  %804 = vmatprep.mubr.msk.bf16.mxu0 %vm1042_vm0, %v1041_v0  ;;  %vm275_vm2 = vcmp.gt.f32.partialorder %v274_v2, 0.0  ;;  %v775_v5 = vsel %vm361_vm3, 1.0, %v1041_v0  ;;  %v785_v8 = vld [vmem:[%s1320_s3] ss:$0 sm:$0xff]  ;;  %v1045_v16 = vmov 1   ;;  %v1046_v17 = vmov 3  }
  0x59   : > { %793 = vmatpush3.msra.mxu1 %v268_v1  ;;  %v773_v4 = vsel %vm275_vm2, 1.0, %v1041_v0  ;;  %885 = vset.pattern.permute.xlu1 %v1043_v6  ;;  %v280_v22 = vshrl.u32 %v279_v19, 7  ;;  %v447_v23 = vand.u32 127, %v279_v19  ;;  %vm546_vm13 = vcmask 1043456   ;;  %s782_s25 = sshll.u32 %s1029_s18, 6  ;;  %s266_s5 = scalar_lea.vmem [#allocation8], %s772_s24 }
  0x5a   : > { %797 = vmatprep.subr.mxu1 %v1041_v0  ;;  %795 = vmatmul.mubr.msk.f32.vlgmr.msra.gmra.mrb[0].mxu1 %vm284_vm1, %v773_v4  ;;  %vm635_vm3 = vcmask 1041408   ;;  %s658_s6 = sshll.u32 %s266_s5, 4  ;;  %s1268_s14 = scalar_lea.hbm %s1321_s4, %s782_s25  ;;  %s1270_s6 = int_to_ptr.vmem [resolvable:$true] %s658_s6 }
  0x5b   : > { %798 = vmatpush3.msra.mxu1 %v268_v1  ;;  %799 = vmatprep.mubr.msk.f32.mxu1 %vm1042_vm0, %v1041_v0  ;;  %v464_v26 = vsub.s32 %v447_v23, %v280_v22  ;;  %vm448_vm9 = vcmp.ge.s32.totalorder %v280_v22, %v447_v23  ;;  %v590_v39 = vadd.s32 1, %v280_v22  ;;  %s644_s22 = scalar_lea.sflag [#allocation5], %s1227_s12  ;;  %s951_s7 = scalar_lea.vmem %s1270_s6, 64 }
  0x5c   : > { %883 = vset.pattern.permute.xlu0 %v1044_v7  ;;  %v777_v35 = vsel %vm448_vm9, 1.0, %v1041_v0  ;;  %p952_p8 = scmp.ne.s32.totalorder %s1270_s6, %s951_s7  ;;  %p1334_p0 = scmp.ne.s32.totalorder %s1326_s28, 0 }
  0x5d   : > { %v451_v38 = vpack.c.bf16 %v777_v35, %v777_v35  ;;  %v591_v40 = vcvt.s32.f32 %v590_v39  ;;  %s1047_s18 = smov [#allocation8]  }
  0x5e   : > { %800 = vmatmul.mubr.msk.f32.vlgmr.msra.gmra.mrb[2].mxu1 %vm284_vm1, %v775_v5  ;;  %p953_p7 = pnand %p952_p8, %p1334_p0  ;;  %s955_s13 = sshll.u32 %s1047_s18, 4  ;;  %s956_s13 = int_to_ptr.vmem [resolvable:$false] %s955_s13 }
  0x5f   : > { %s957_s8 = scalar_lea.vmem %s956_s13, 128  ;;  %p958_p10 = scmp.lt.s32.totalorder %s1270_s6, %s956_s13 }
  0x60   : > { %p954_p4 = pneg %p953_p7  ;;  %p959_p12 = scmp.lt.s32.totalorder %s957_s8, %s951_s7 }
  0x62   : > { %p960_p1 = por %p959_p12, %p958_p10 }
  0x64   : > { %p961_p2 = pnand %p960_p1, %p954_p4 }
 0x12d   : > { %v354_v9 = vpop.f32.mrb[0].mxu1 }
 0x12e   : > { %v355_v10 = vadd.f32 %v785_v8, %v354_v9  ;;  %v796_v11 = vpop.f32.mrb[1].mxu1 }
 0x130   : > { %359 = vst.msk [vmem:[#allocation2] sm:$0xff] %vm358_vm4, %v355_v10  ;;  %vm637_vm4 = vcmask 1042432  }
 0x131   : > { %v440_v12 = vpop.f32.mrb[2].mxu1 }
 0x132   : > { %v441_v13 = vadd.f32 %v785_v8, %v440_v12  ;;  %v801_v14 = vpop.f32.mrb[3].mxu1 }
 0x134   : > { %505 = vperm.xlu1 %885, %v441_v13   ;;  %460 = vperm.xlu0 %883, %v441_v13  }
 0x137   : > { %v452_v15 = vld [vmem:[#allocation2] sm:$0xff] }
 0x138   : > { %886 = vset.pattern.permute.xlu1 %v1044_v7  ;;  %884 = vset.pattern.permute.xlu0 %v1045_v16 }
 0x139   : > { %455 = vperm.xlu1 %886, %v452_v15   ;;  %485 = vperm.xlu0 %884, %v441_v13  }
 0x13d   : > { %887 = vset.pattern.permute.xlu1 %v1045_v16  ;;  %888 = vset.pattern.permute.xlu0 %v1046_v17 }
 0x13e   : > { %481 = vperm.xlu1 %887, %v452_v15   ;;  %525 = vperm.xlu0 %888, %v441_v13  }
 0x142   : > { %889 = vset.pattern.permute.xlu1 %v1043_v6 }
 0x143   : > { %501 = vperm.xlu1 %889, %v452_v15  }
 0x147   : > { %890 = vset.pattern.permute.xlu1 %v1046_v17 }
 0x148   : > { %521 = vperm.xlu1 %890, %v452_v15  }
 0x1b3   : > { %v506_v18 = vpop.permute.xlu1 %505  ;;  %v461_v20 = vpop.permute.xlu0 %460 }
 0x1b4   : > { %v510_v29 = vrot.slane %v506_v18, %v464_v26  ;;  %v465_v31 = vrot.slane %v461_v20, %v464_v26 }
 0x1b8   : > { %v456_v21 = vpop.permute.xlu1 %455  ;;  %v486_v24 = vpop.permute.xlu0 %485 }
 0x1b9   : > { %v490_v27 = vrot.slane %v486_v24, %v464_v26  ;;  %vm479_vm7 = vcmp.eq.f32.partialorder %v456_v21, %v465_v31 }
 0x1bd   : > { %v482_v25 = vpop.permute.xlu1 %481  ;;  %v526_v30 = vpop.permute.xlu0 %525 }
 0x1be   : > { %vm498_vm5 = vcmp.eq.f32.partialorder %v482_v25, %v490_v27  ;;  %v530_v32 = vrot.slane %v526_v30, %v464_v26 }
 0x1bf   : > { %vm499_vm8 = vmand %vm479_vm7, %vm498_vm5  ;;  %vm641_vm5 = vcmask 60416  }
 0x1c2   : > { %v502_v28 = vpop.permute.xlu1 %501 }
 0x1c3   : > { %vm518_vm6 = vcmp.eq.f32.partialorder %v502_v28, %v510_v29 }
 0x1c4   : > { %vm519_vm10 = vmand %vm499_vm8, %vm518_vm6 }
 0x1c7   : > { %v522_v33 = vpop.permute.xlu1 %521 }
 0x1c8   : > { %vm538_vm11 = vcmp.eq.f32.partialorder %v522_v33, %v530_v32 }
 0x1c9   : > { %vm539_vm12 = vmand %vm519_vm10, %vm538_vm11 }
 0x1ca   : > { %v778_v34 = vsel %vm539_vm12, 1.0, %v1041_v0  ;;  %v592_v41 = vsel %vm539_vm12, %v591_v40, 0.0 }
 0x1cb   : > { %v542_v36 = vpack.c.bf16 %v778_v34, %v778_v34 }
 0x1cd   : > { %v548_v37 = vsel %vm546_vm13, %v542_v36, 0 }
 0x1ce   : > { %803 = vmatpush3.bf16.msra.mxu0 %v548_v37 }
 0x1d1   : > { %805 = vmatmul.mubr.msk.bf16.vlgmr.msra.gmra.mrb[0].mxu0 %vm284_vm1, %v451_v38 }
 0x2a4   : > { %v584_v42 = vpop.f32.mrb[0].mxu0 }
 0x2a5   : > { %vm593_vm14 = vcmp.eq.f32.partialorder %v584_v42, 1.0  ;;  %vm603_vm15 = vcmp.eq.f32.partialorder %v584_v42, 2.0  ;;  %vm613_vm0 = vcmp.eq.f32.partialorder %v584_v42, 3.0  ;;  %vm623_vm2 = vcmp.eq.f32.partialorder %v584_v42, 4.0  ;;  %v806_v43 = vpop.f32.mrb[1].mxu0 }
 0x2a6   : > { %v594_v44 = vsel %vm593_vm14, %v592_v41, 0.0  ;;  %v604_v45 = vsel %vm603_vm15, %v592_v41, 0.0  ;;  %v614_v46 = vsel %vm613_vm0, %v592_v41, 0.0  ;;  %v624_v47 = vsel %vm623_vm2, %v592_v41, 0.0  ;;  %v587_v48 = vpop.f32.mrb[2].mxu0 }
 0x2a7   : > { %v595_v49 = vsel %vm284_vm1, %v594_v44, 0.0  ;;  %v605_v50 = vsel %vm284_vm1, %v604_v45, 0.0  ;;  %v615_v51 = vsel %vm284_vm1, %v614_v46, 0.0  ;;  %v625_v52 = vsel %vm284_vm1, %v624_v47, 0.0  ;;  %v807_v53 = vpop.f32.mrb[3].mxu0 }
 0x2a8   : > { %v596_v54 = vrot.slane %v595_v49, 4  ;;  %v606_v55 = vrot.slane %v605_v50, 4  ;;  %v616_v56 = vrot.slane %v615_v51, 4  ;;  %v626_v57 = vrot.slane %v625_v52, 4 }
 0x2a9   : > { %vm633_vm1 = vcmask 1040384  }
 0x2aa   : > { %v597_v58 = vadd.f32 %v596_v54, %v595_v49  ;;  %v607_v59 = vadd.f32 %v606_v55, %v605_v50  ;;  %v617_v60 = vadd.f32 %v616_v56, %v615_v51  ;;  %v627_v61 = vadd.f32 %v626_v57, %v625_v52 }
 0x2ac   : > { %v598_v62 = vrot.slane %v597_v58, 2  ;;  %v608_v63 = vrot.slane %v607_v59, 2  ;;  %v618_v0 = vrot.slane %v617_v60, 2  ;;  %v628_v1 = vrot.slane %v627_v61, 2 }
 0x2ae   : > { %v599_v2 = vadd.f32 %v598_v62, %v597_v58  ;;  %v609_v3 = vadd.f32 %v608_v63, %v607_v59  ;;  %v619_v4 = vadd.f32 %v618_v0, %v617_v60  ;;  %v629_v5 = vadd.f32 %v628_v1, %v627_v61 }
 0x2b0   : > { %v600_v6 = vrot.slane %v599_v2, 1  ;;  %v610_v7 = vrot.slane %v609_v3, 1  ;;  %v620_v8 = vrot.slane %v619_v4, 1  ;;  %v630_v9 = vrot.slane %v629_v5, 1 }
 0x2b2   : > { %v601_v10 = vadd.f32 %v600_v6, %v599_v2  ;;  %v611_v11 = vadd.f32 %v610_v7, %v609_v3  ;;  %v621_v12 = vadd.f32 %v620_v8, %v619_v4  ;;  %v631_v13 = vadd.f32 %v630_v9, %v629_v5 }
 0x2b4   : > { %v634_v14 = vsel %vm633_vm1, %v601_v10, %v611_v11 }
 0x2b5   : > { %v636_v15 = vsel %vm635_vm3, %v634_v14, %v621_v12 }
 0x2b6   : > { %v638_v16 = vsel %vm637_vm4, %v636_v15, %v631_v13 }
 0x2b7   : > { %v808_v17 = vtrunc.f32 %v638_v16 }
 0x2b9   : > { %v809_v18 = vcvt.f32.s32 %v808_v17 }
 0x2bb   : > { %v780_v19 = vadd.s32 4294967295, %v809_v18 }
 0x2bd   : > { %642 = vst.msk [vmem:[%s266_s5] sm:$0xf] %vm641_vm5, %v780_v19 }
 0x2be   : > { %964 = shalt.err (!%p961_p2)
}
 0x2bf   : > { %s965_s12 = scalar_lea.hbm %s1268_s14, 64  ;;  %s969_s27 = scalar_lea.hbm %s1321_s4, 128 }
 0x2c0   : > { %p966_p9 = scmp.ne.s32.totalorder %s1268_s14, %s965_s12  ;;  %p970_p6 = scmp.lt.u32.totalorder %s1268_s14, %s1321_s4 }
 0x2c1   : > { %p971_p13 = scmp.lt.u32.totalorder %s969_s27, %s965_s12  ;;  %p973_p8 = scmp.lt.u32.totalorder %s965_s12, %s1268_s14 }
 0x2c2   : > { %p967_p11 = pnand %p966_p9, %p1334_p0 }
 0x2c3   : > { %p972_p5 = por %p971_p13, %p970_p6 }
 0x2c4   : > { %p968_p3 = pneg %p967_p11 }
 0x2c5   : > { %p974_p7 = por %p973_p8, %p972_p5 }
 0x2c7   : > { %p975_p4 = pnand %p974_p7, %p968_p3 }
 0x2c9   : > { %978 = shalt.err (!%p975_p4)
}
 0x2ca   : > { %814 = dma.vmem_to_hbm [thread:$0]  (%p1334_p0), %s1270_s6, 64, %s1268_s14, %s644_s22  }
 0x2cb PF: > { %s670_s25 = sand.u32 1, %s1017_s15   ;;  %p1335_p10 = scmp.ne.s32.totalorder %s1327_s30, 0 }
 0x2cc   : > { %p1336_p12 = scmp.ge.s32.totalorder %s1037_s20, 2  ;;  %s671_s5 = scalar_lea.sflag [#allocation5], %s670_s25 }
 0x2ce   : > { %p824_p1 = pnand %p1336_p12, %p1335_p10 }
 0x2d0   : > { %1012 = dma.done.wait (!%p824_p1), %s671_s5, 64  }
 0x2d1   : > { %1014 = vsyncadd (!%p824_p1), %s671_s5, 4294967232  ;;  %s23_s20 = sadd.s32 1, %s1037_s20   ;;  %s1337_s15 = smov %s1021_s16 }
 0x2d2   : > { %p20_p2 = scmp.ge.s32.totalorder %s23_s20, 4   ;;  %s1338_s16 = smov %s1025_s17 }
 0x2d3   : > { %s1339_s17 = smov %s1129_s29  ;;  %s1340_s18 = smov %s1033_s19 }
 0x2d4   : > { %s1341_s19 = smov %s1343_s23  ;;  %22 = sbr.rel (!%p20_p2) target bundleno = 8 (0x8), region = 98 }
 0x2db   :  { %676 = vsyncpa [#allocation4], 1 }
 0x2dc   :  { %678 = vsyncpa [#allocation4 + $0x1], 1 }
 0x2dd   :  { %679 = vsyncpa [#allocation7], 1 }
 0x2de   :  { %681 = vsyncpa [#allocation7 + $0x1], 1 }
 0x2df   :  { %682 = vsyncpa [#allocation5], 1 }
 0x2e0   :  { %684 = vsyncpa [#allocation5 + $0x1], 1 }

</bundles_post_ra>
